<compile_context>
chip_gen: v7x
topology: tpu7x:2x2x1
jax: 0.10.0
libtpu: 0.0.40
codegen_flags: <defaults>
</compile_context>

<pallas_src>
import functools

import jax
import jax.numpy as jnp
from jax import lax
from jax.experimental import pallas as pl
from jax.experimental.pallas import tpu as pltpu

KH, KW = 3, 3     # pooling kernel
PAD = 2           # padding on each side of H and W
STRIDE = 1


def _round_up(v: int, m: int) -> int:
    return ((v + m - 1) // m) * m


def _cdiv(a: int, b: int) -> int:
    return (a + b - 1) // b


def _vmem_capacity_bytes() -> int:
    """Physical per-core VMEM; conservative (v7x-sized) fallback if query fails."""
    try:
        info = pltpu.get_tpu_info()
        for name in ("vmem_capacity_bytes", "vmem_size_bytes", "vmem_bytes"):
            v = getattr(info, name, None)
            if isinstance(v, int) and v > 0:
                return v
    except Exception:
        pass
    return 64 << 20


def _identity_fill(dtype):
    # Identity element of `max` for this dtype (-inf for floats, INT_MIN for ints).
    if jnp.issubdtype(dtype, jnp.floating):
        return float("-inf")
    return int(jnp.iinfo(dtype).min)


def _maxpool3x3_kernel(*refs, has_other, dr, dc, fill):
    """refs = (x_ref[, other_ref], o_ref, xp_ref)

    x_ref:     (ncb, H,  W )  input planes (auto-pipelined block)
    other_ref: (ncb, Ho, Wo)  optional fused addend (same spec as output)
    o_ref:     (ncb, Ho, Wo)  pooled (+ other) output planes
    xp_ref:    (ncb, Ha, Wa)  scratch; data at the ALIGNED origin (dr, dc),
                              -inf guard strips occupy the 2 rows/cols around it.
    """
    if has_other:
        x_ref, other_ref, o_ref, xp_ref = refs
    else:
        x_ref, o_ref, xp_ref = refs
        other_ref = None

    ncb, H, W = x_ref.shape
    _, Ho, Wo = o_ref.shape
    dt = xp_ref.dtype

    # --- 1) Guard strips ONLY (no full-scratch fill; the interior is written
    #        exactly once by the aligned copy below).  Re-done every step on
    #        purpose: the plane axis is "parallel" and may be sharded across
    #        TensorCores, so a pid==0 one-time init would be skipped on core 1.
    row_strip = jnp.full((ncb, PAD, W + 2 * PAD), fill, dt)
    col_strip = jnp.full((ncb, H, PAD), fill, dt)
    xp_ref[:, dr - PAD:dr, dc - PAD:dc + W + PAD] = row_strip            # top
    xp_ref[:, dr + H:dr + H + PAD, dc - PAD:dc + W + PAD] = row_strip    # bottom
    xp_ref[:, dr:dr + H, dc - PAD:dc] = col_strip                        # left
    xp_ref[:, dr:dr + H, dc + W:dc + W + PAD] = col_strip                # right

    # --- 2) Aligned interior copy: dr % sublane_tile == 0 and dc % 128 == 0,
    #        so this is a plain (masked-tail) vld/vst with no realignment.
    xp_ref[:, dr:dr + H, dc:dc + W] = x_ref[...]

    # --- 3) Separable 3x3 max.
    # 1x3 pass along W: window-start taps at scratch columns dc-2, dc-1, dc,
    # read as static slices (unambiguous semantics; the small realignment is
    # XLU work, which has slack in this store/VPU-bound kernel).
    hs = H + 2 * PAD                       # rows needed by the H pass (= Ho + 2)
    r0 = dr - PAD
    w0 = xp_ref[:, r0:r0 + hs, dc - 2:dc - 2 + Wo]
    w1 = xp_ref[:, r0:r0 + hs, dc - 1:dc - 1 + Wo]
    w2 = xp_ref[:, r0:r0 + hs, dc:dc + Wo]
    r = jnp.maximum(jnp.maximum(w0, w1), w2)           # (ncb, H+4, Wo)

    # 3x1 pass along H: cheap sublane value slices.
    out = jnp.maximum(jnp.maximum(r[:, 0:Ho, :], r[:, 1:1 + Ho, :]),
                      r[:, 2:2 + Ho, :])               # (ncb, Ho, Wo)

    # --- 4) Optional fused `+ other`, single lane-aligned output store.
    if has_other:
        out = out + other_ref[...]
    o_ref[...] = out


def max_pool2d_3x3_s1_p2(x, other=None):
    """max_pool2d(kernel=(3,3), stride=1, padding=(2,2), dilation=1) on NCHW,
    optionally fused with `+ other` when `other` already has the output shape."""
    N, C, H, W = x.shape
    Ho = (H + 2 * PAD - KH) // STRIDE + 1      # = H + 2
    Wo = (W + 2 * PAD - KW) // STRIDE + 1      # = W + 2
    NC = N * C

    dtype = x.dtype
    isz = dtype.itemsize
    sub = max(8, 32 // isz)                    # sublane tile: 8 (f32) / 16 (bf16) / 32 (int8)
    fill = _identity_fill(dtype)

    # Aligned data origin inside the scratch; the 2-wide guards sit just before it.
    dr, dc = sub, 128
    Ha = dr + _round_up(H + PAD, sub)          # >= dr + H + 2
    Wa = dc + _round_up(W + PAD, 128)          # >= dc + W + 2

    other_arr = None
    fuse = False
    if other is not None:
        other_arr = jnp.asarray(other)
        fuse = (other_arr.shape == (N, C, Ho, Wo)) and (other_arr.dtype == dtype)

    # --- Tile-accurate, dtype-aware per-plane footprints (count (sublane,128)-
    #     padded blocks, double buffering and live temporaries, not raw H*W).
    in_tile = _round_up(H, sub) * _round_up(W, 128) * isz
    out_tile = _round_up(Ho, sub) * _round_up(Wo, 128) * isz
    oth_tile = out_tile if fuse else 0
    scr_tile = Ha * Wa * isz
    tmp_tile = 5 * _round_up(H + 2 * PAD, sub) * _round_up(Wo, 128) * isz
    per_plane_vmem = 2 * (in_tile + out_tile + oth_tile) + scr_tile + tmp_tile
    per_plane_hbm = in_tile + out_tile + oth_tile

    vmem_cap = _vmem_capacity_bytes()
    budget = min(28 << 20, (vmem_cap * 5) // 16)   # ~20 MiB on v7x, ~28 MiB on v5e/v6e

    # --- Planes per grid step: as big as the budget allows, but keep >= 4 steps
    #     (>= 2 per TensorCore on dual-TC chips) with ~0.5-4 MiB per step so the
    #     BlockSpec pipeline overlaps DMA with compute.
    nc_blk = max(1, min(NC, budget // per_plane_vmem))
    MIN_STEPS = 4
    MIN_STEP_BYTES = 512 << 10
    MAX_STEP_BYTES = 4 << 20
    cand = _cdiv(NC, MIN_STEPS)
    if NC >= 2 and cand >= 1 and cand * per_plane_hbm >= MIN_STEP_BYTES:
        nc_blk = min(nc_blk, cand)
    cap = max(1, MAX_STEP_BYTES // per_plane_hbm)
    if cap < nc_blk and _cdiv(NC, cap) >= MIN_STEPS:
        nc_blk = cap
    num_steps = _cdiv(NC, nc_blk)

    hard_cap = max(16 << 20, vmem_cap - (8 << 20))
    vmem_limit = int(min(hard_cap,
                         max(32 << 20, 2 * budget,
                             nc_blk * per_plane_vmem + (4 << 20))))

    # NOTE: when NC % nc_blk != 0 the last block reads a few out-of-range planes
    # (unspecified VMEM contents).  That is safe because the corresponding
    # output planes are never written back; keep this invariant in mind if this
    # kernel ever moves to manual DMA.
    kernel = functools.partial(_maxpool3x3_kernel, has_other=fuse,
                               dr=dr, dc=dc, fill=fill)

    operands = [x.reshape(NC, H, W)]
    in_specs = [pl.BlockSpec((nc_blk, H, W), lambda i: (i, 0, 0))]
    if fuse:
        operands.append(other_arr.reshape(NC, Ho, Wo))
        in_specs.append(pl.BlockSpec((nc_blk, Ho, Wo), lambda i: (i, 0, 0)))

    pooled = pl.pallas_call(
        kernel,
        out_shape=jax.ShapeDtypeStruct((NC, Ho, Wo), dtype),
        grid=(num_steps,),
        in_specs=in_specs,
        out_specs=pl.BlockSpec((nc_blk, Ho, Wo), lambda i: (i, 0, 0)),
        scratch_shapes=[pltpu.VMEM((nc_blk, Ha, Wa), dtype)],
        compiler_params=pltpu.CompilerParams(
            dimension_semantics=("parallel",),
            vmem_limit_bytes=vmem_limit,
        ),
    )(*operands)

    out = pooled.reshape(N, C, Ho, Wo)
    if other is not None and not fuse:
        # General broadcasting fallback (kept outside the kernel).
        out = out + other_arr
    return out


def model_forward(x, other=None):
    """Equivalent of Model.forward. x: (N, C, H, W)."""
    # t1 = max_pool2d(x, 3x3, stride 1, pad 2); t2 = t1 + other
    # TODO(synk): PyTorch's default `other=[]` makes `t1 + []` an empty-tensor
    # broadcast error; the only well-defined semantics for a missing `other` is
    # an identity add, which is what we do here.
    return max_pool2d_3x3_s1_p2(x, other=other)


if __name__ == "__main__":
    key = jax.random.PRNGKey(0)
    x = jax.random.normal(key, (2, 4, 16, 16), dtype=jnp.float32)

    out = jax.block_until_ready(model_forward(x))

    def ref_pool(v):
        return lax.reduce_window(
            v, -jnp.inf, lax.max,
            window_dimensions=(1, 1, KH, KW),
            window_strides=(1, 1, STRIDE, STRIDE),
            padding=((0, 0), (0, 0), (PAD, PAD), (PAD, PAD)))

    ref = ref_pool(x)
    assert out.shape == (2, 4, 18, 18), out.shape
    assert jnp.allclose(out, ref), "mismatch vs reference max_pool2d"

    # Fused `t1 + other` path.
    other = jax.random.normal(jax.random.PRNGKey(1), (2, 4, 18, 18), dtype=jnp.float32)
    out2 = jax.block_until_ready(model_forward(x, other))
    assert jnp.allclose(out2, ref + other), "mismatch on fused `+ other` path"

    # The module's original input shape.
    x2 = jax.random.normal(jax.random.PRNGKey(2), (2, 3, 64, 64), dtype=jnp.float32)
    out3 = jax.block_until_ready(model_forward(x2))
    assert out3.shape == (2, 3, 66, 66), out3.shape
    assert jnp.allclose(out3, ref_pool(x2)), "mismatch at (2,3,64,64)"

    print("KERNEL_OK")
</pallas_src>

<mosaic_0001>
module attributes {stable_mosaic.version = 11 : i64} {
  func.func @_maxpool3x3_kernel(%arg0: i32, %arg1: memref<8x16x16xf32, #tpu.memory_space<vmem>>, %arg2: memref<8x18x18xf32, #tpu.memory_space<vmem>>, %arg3: memref<8x32x256xf32, #tpu.memory_space<vmem>>) attributes {dimension_semantics = [#tpu.dimension_semantics<parallel>], iteration_bounds = array<i64: 1>, scalar_prefetch = 0 : i64, scratch_operands = 1 : i64, tpu.core_type = #tpu.core_type<tc>, window_params = [{transform_indices = @transform_0, window_bounds = array<i64: 8, 16, 16>}, {transform_indices = @transform_1, window_bounds = array<i64: 8, 18, 18>}]} {
    %cst = arith.constant 0xFF800000 : f32
    %0 = vector.broadcast %cst : f32 to vector<8x2x20xf32>
    %cst_0 = arith.constant 0xFF800000 : f32
    %1 = vector.broadcast %cst_0 : f32 to vector<8x16x2xf32>
    %c0 = arith.constant 0 : index
    %c6 = arith.constant 6 : index
    %c126 = arith.constant 126 : index
    %2 = vector.load %arg3[%c0, %c6, %c126] : memref<8x32x256xf32, #tpu.memory_space<vmem>>, vector<8x2x20xf32>
    tpu.vector_store %arg3[%c0, %c6, %c126], %0 {strides = array<i32>} : memref<8x32x256xf32, #tpu.memory_space<vmem>>, vector<8x2x20xf32>,
    %c0_1 = arith.constant 0 : index
    %c24 = arith.constant 24 : index
    %c126_2 = arith.constant 126 : index
    %3 = vector.load %arg3[%c0_1, %c24, %c126_2] : memref<8x32x256xf32, #tpu.memory_space<vmem>>, vector<8x2x20xf32>
    tpu.vector_store %arg3[%c0_1, %c24, %c126_2], %0 {strides = array<i32>} : memref<8x32x256xf32, #tpu.memory_space<vmem>>, vector<8x2x20xf32>,
    %c0_3 = arith.constant 0 : index
    %c8 = arith.constant 8 : index
    %c126_4 = arith.constant 126 : index
    %4 = vector.load %arg3[%c0_3, %c8, %c126_4] : memref<8x32x256xf32, #tpu.memory_space<vmem>>, vector<8x16x2xf32>
    tpu.vector_store %arg3[%c0_3, %c8, %c126_4], %1 {strides = array<i32>} : memref<8x32x256xf32, #tpu.memory_space<vmem>>, vector<8x16x2xf32>,
    %c0_5 = arith.constant 0 : index
    %c8_6 = arith.constant 8 : index
    %c144 = arith.constant 144 : index
    %5 = vector.load %arg3[%c0_5, %c8_6, %c144] : memref<8x32x256xf32, #tpu.memory_space<vmem>>, vector<8x16x2xf32>
    tpu.vector_store %arg3[%c0_5, %c8_6, %c144], %1 {strides = array<i32>} : memref<8x32x256xf32, #tpu.memory_space<vmem>>, vector<8x16x2xf32>,
    %c0_7 = arith.constant 0 : index
    %c0_8 = arith.constant 0 : index
    %c0_9 = arith.constant 0 : index
    %6 = vector.load %arg1[%c0_7, %c0_8, %c0_9] : memref<8x16x16xf32, #tpu.memory_space<vmem>>, vector<8x16x16xf32>
    %c0_10 = arith.constant 0 : index
    %c8_11 = arith.constant 8 : index
    %c128 = arith.constant 128 : index
    %7 = vector.load %arg3[%c0_10, %c8_11, %c128] : memref<8x32x256xf32, #tpu.memory_space<vmem>>, vector<8x16x16xf32>
    tpu.vector_store %arg3[%c0_10, %c8_11, %c128], %6 {strides = array<i32>} : memref<8x32x256xf32, #tpu.memory_space<vmem>>, vector<8x16x16xf32>,
    %c0_12 = arith.constant 0 : index
    %c6_13 = arith.constant 6 : index
    %c126_14 = arith.constant 126 : index
    %8 = vector.load %arg3[%c0_12, %c6_13, %c126_14] : memref<8x32x256xf32, #tpu.memory_space<vmem>>, vector<8x20x18xf32>
    %c0_15 = arith.constant 0 : index
    %c6_16 = arith.constant 6 : index
    %c127 = arith.constant 127 : index
    %9 = vector.load %arg3[%c0_15, %c6_16, %c127] : memref<8x32x256xf32, #tpu.memory_space<vmem>>, vector<8x20x18xf32>
    %c0_17 = arith.constant 0 : index
    %c6_18 = arith.constant 6 : index
    %c128_19 = arith.constant 128 : index
    %10 = vector.load %arg3[%c0_17, %c6_18, %c128_19] : memref<8x32x256xf32, #tpu.memory_space<vmem>>, vector<8x20x18xf32>
    %11 = arith.maximumf %8, %9 : vector<8x20x18xf32>
    %12 = arith.maximumf %11, %10 : vector<8x20x18xf32>
    %13 = vector.extract_strided_slice %12 {offsets = [0, 0, 0], sizes = [8, 18, 18], strides = [1, 1, 1]} : vector<8x20x18xf32> to vector<8x18x18xf32>
    %14 = vector.extract_strided_slice %12 {offsets = [0, 1, 0], sizes = [8, 18, 18], strides = [1, 1, 1]} : vector<8x20x18xf32> to vector<8x18x18xf32>
    %15 = arith.maximumf %13, %14 : vector<8x18x18xf32>
    %16 = vector.extract_strided_slice %12 {offsets = [0, 2, 0], sizes = [8, 18, 18], strides = [1, 1, 1]} : vector<8x20x18xf32> to vector<8x18x18xf32>
    %17 = arith.maximumf %15, %16 : vector<8x18x18xf32>
    %c0_20 = arith.constant 0 : index
    %c0_21 = arith.constant 0 : index
    %c0_22 = arith.constant 0 : index
    %18 = vector.load %arg2[%c0_20, %c0_21, %c0_22] : memref<8x18x18xf32, #tpu.memory_space<vmem>>, vector<8x18x18xf32>
    tpu.vector_store %arg2[%c0_20, %c0_21, %c0_22], %17 {strides = array<i32>} : memref<8x18x18xf32, #tpu.memory_space<vmem>>, vector<8x18x18xf32>,
    return
  }
  func.func @transform_0(%arg0: i32) -> (i32, i32, i32) {
    %c0_i32 = arith.constant 0 : i32
    %c0_i32_0 = arith.constant 0 : i32
    %c0_i32_1 = arith.constant 0 : i32
    return %arg0, %c0_i32, %c0_i32_0 : i32, i32, i32
  }
  func.func @transform_1(%arg0: i32) -> (i32, i32, i32) {
    %c0_i32 = arith.constant 0 : i32
    %c0_i32_0 = arith.constant 0 : i32
    %c0_i32_1 = arith.constant 0 : i32
    return %arg0, %c0_i32, %c0_i32_0 : i32, i32, i32
  }
}

</mosaic_0001>

<bundles_post_ra>
// kernel: tpu_custom_call.1
= control target key start
LH: loop header
LB: loop body
LE: loop exit
PB: predicated region body
PF: predicated region fallthrough
CT: control target
= control target key end

     0   :  { %6 = vsyncpa [#allocation4], 0  ;;  %s1406_s6 = smov [#allocation3]   ;;  %s3261_s0 = inlined_call_operand.hbm [shape: f32[8,16,16], index: 0, kind: input, shape index: {}]   ;;  %s3262_s1 = inlined_call_operand.vmem [shape: f32[8,18,18], index: 1, kind: output, shape index: {}]  }
   0x1   :  { %s12_s7 = sshll.u32 %s1406_s6, 4  ;;  %s1382_s10 = scalar_lea.hbm %s3261_s0, 2048  ;;  %s13_s7 = int_to_ptr.vmem [resolvable:$true] %s12_s7 }
   0x2   :  { %p1383_p0 = scmp.ne.s32.totalorder %s3261_s0, %s1382_s10  ;;  %p1386_p1 = scmp.lt.u32.totalorder %s1382_s10, %s3261_s0 }
   0x4   :  { %p1388_p2 = pnand %p1386_p1, %p1383_p0 }
   0x6   :  { %1391 = shalt.err (!%p1388_p2)
}
   0x7   :  { %s1392_s15 = scalar_lea.vmem %s13_s7, 2048  ;;  %p1397_p4 = scmp.lt.s32.totalorder %s13_s7, %s13_s7 }
   0x8   :  { %p1393_p3 = scmp.ne.s32.totalorder %s13_s7, %s1392_s15  ;;  %p1398_p5 = scmp.lt.s32.totalorder %s1392_s15, %s1392_s15 }
   0xa   :  { %p1399_p6 = por %p1398_p5, %p1397_p4 }
   0xc   :  { %p1400_p7 = pnand %p1399_p6, %p1393_p3 }
   0xe   :  { %1403 = shalt.err (!%p1400_p7)
}
   0xf   :  { %s1407_s16 = smov 128   ;;  %s1408_s17 = smov 8  }
  0x10   :  { %18 = dma.hbm_to_vmem [thread:$0]  %s3261_s0, 2048, %s13_s7, [#allocation4], %s1407_s16, %s1407_s16, %s1408_s17  }
  0x11   :  { %1404 = dma.done.wait [#allocation4], 2048  }
  0x12   :  { %1405 = vsyncadd [#allocation4], 4294965248  ;;  %vm58_vm0 = vcmask 1048560   ;;  %vm22_vm1 = vcmask 1048566   ;;  %v1409_v0 = vmov -inf   ;;  %vm42_vm2 = vcmask 140288  }
  0x13   :  { %59 = vst.msk [vmem:[#allocation2 + $0x10] sm:$0xff] %vm58_vm0, %v1409_v0  ;;  %60 = vst.msk [vmem:[#allocation2 + $0x20] sm:$0xff] %vm58_vm0, %v1409_v0  ;;  %vm24_vm3 = vcmask 146438   ;;  %vm75_vm4 = vcmask 146560   ;;  %vm40_vm5 = vcmask 1042416   ;;  %vm108_vm6 = vcmask 130048  }
  0x14   :  { %61 = vst.msk [vmem:[#allocation2 + $0x50] sm:$0xff] %vm58_vm0, %v1409_v0  ;;  %62 = vst.msk [vmem:[#allocation2 + $0x60] sm:$0xff] %vm58_vm0, %v1409_v0  ;;  %v92_v1 = vld [vmem:[#allocation3] sm:$0xff]  ;;  %v93_v2 = vld [vmem:[#allocation3 + $0x8] sm:$0xff]  ;;  %s1410_s0 = smov 127   ;;  %s1411_s20 = smov 126  }
  0x15   :  { %63 = vst.msk [vmem:[#allocation2 + $0x90] sm:$0xff] %vm58_vm0, %v1409_v0  ;;  %64 = vst.msk [vmem:[#allocation2 + $0xa0] sm:$0xff] %vm58_vm0, %v1409_v0  ;;  %v94_v3 = vld [vmem:[#allocation3 + $0x10] sm:$0xff]  ;;  %v95_v8 = vld [vmem:[#allocation3 + $0x18] sm:$0xff]  ;;  %vm381_vm7 = vcmask 1039360   ;;  %vm766_vm8 = vcmask 1046528  }
  0x16   :  { %65 = vst.msk [vmem:[#allocation2 + $0xd0] sm:$0xff] %vm58_vm0, %v1409_v0  ;;  %66 = vst.msk [vmem:[#allocation2 + $0xe0] sm:$0xff] %vm58_vm0, %v1409_v0  ;;  %v96_v9 = vld [vmem:[#allocation3 + $0x20] sm:$0xff]  ;;  %v97_v10 = vld [vmem:[#allocation3 + $0x28] sm:$0xff]  ;;  %vm975_vm9 = vcmask 1045504   ;;  %s1412_s21 = smov 2  }
  0x17   :  { %67 = vst.msk [vmem:[#allocation2 + $0x110] sm:$0xff] %vm58_vm0, %v1409_v0  ;;  %68 = vst.msk [vmem:[#allocation2 + $0x120] sm:$0xff] %vm58_vm0, %v1409_v0  ;;  %v98_v13 = vld [vmem:[#allocation3 + $0x30] sm:$0xff]  ;;  %v99_v14 = vld [vmem:[#allocation3 + $0x38] sm:$0xff]  ;;  %vm1296_vm10 = vcmask 15360   ;;  %vm1346_vm11 = vcmask 146432  }
  0x18   :  { %69 = vst.msk [vmem:[#allocation2 + $0x150] sm:$0xff] %vm58_vm0, %v1409_v0  ;;  %70 = vst.msk [vmem:[#allocation2 + $0x160] sm:$0xff] %vm58_vm0, %v1409_v0  ;;  %v100_v17 = vld [vmem:[#allocation3 + $0x40] sm:$0xff]  ;;  %v101_v18 = vld [vmem:[#allocation3 + $0x48] sm:$0xff] }
  0x19   :  { %71 = vst.msk [vmem:[#allocation2 + $0x190] sm:$0xff] %vm58_vm0, %v1409_v0  ;;  %72 = vst.msk [vmem:[#allocation2 + $0x1a0] sm:$0xff] %vm58_vm0, %v1409_v0  ;;  %v102_v21 = vld [vmem:[#allocation3 + $0x50] sm:$0xff]  ;;  %v103_v22 = vld [vmem:[#allocation3 + $0x58] sm:$0xff] }
  0x1a   :  { %73 = vst.msk [vmem:[#allocation2 + $0x1d0] sm:$0xff] %vm58_vm0, %v1409_v0  ;;  %74 = vst.msk [vmem:[#allocation2 + $0x1e0] sm:$0xff] %vm58_vm0, %v1409_v0  ;;  %v1547_v4 = vld [vmem:[#allocation2 + $0x10] sm:$0xff]  ;;  %v1569_v12 = vld [vmem:[#allocation2 + $0x20] sm:$0xff] }
  0x1b   :  { %23 = vst.msk [vmem:[#allocation2] sm:$0xc0] %vm22_vm1, %v1409_v0  ;;  %26 = vst.msk [vmem:[#allocation2 + $0x40] sm:$0xc0] %vm22_vm1, %v1409_v0  ;;  %257 = vrot.lane.b32.xlu1 %v1547_v4, %s1410_s0  ;;  %v1601_v24 = vld [vmem:[#allocation2 + $0x50] sm:$0xff]  ;;  %v104_v25 = vld [vmem:[#allocation3 + $0x60] sm:$0xff] }
  0x1c   :  { %28 = vst.msk [vmem:[#allocation2 + $0x80] sm:$0xc0] %vm22_vm1, %v1409_v0  ;;  %30 = vst.msk [vmem:[#allocation2 + $0xc0] sm:$0xc0] %vm22_vm1, %v1409_v0  ;;  %v105_v26 = vld [vmem:[#allocation3 + $0x68] sm:$0xff]  ;;  %v106_v27 = vld [vmem:[#allocation3 + $0x70] sm:$0xff] }
  0x1d   :  { %32 = vst.msk [vmem:[#allocation2 + $0x100] sm:$0xc0] %vm22_vm1, %v1409_v0  ;;  %34 = vst.msk [vmem:[#allocation2 + $0x140] sm:$0xc0] %vm22_vm1, %v1409_v0  ;;  %v1611_v29 = vld [vmem:[#allocation2 + $0x60] sm:$0xff]  ;;  %v107_v30 = vld [vmem:[#allocation3 + $0x78] sm:$0xff] }
  0x1e   :  { %36 = vst.msk [vmem:[#allocation2 + $0x180] sm:$0xc0] %vm22_vm1, %v1409_v0  ;;  %38 = vst.msk [vmem:[#allocation2 + $0x1c0] sm:$0xc0] %vm22_vm1, %v1409_v0  ;;  %v1637_v36 = vld [vmem:[#allocation2 + $0x90] sm:$0xff]  ;;  %v1645_v38 = vld [vmem:[#allocation2 + $0xa0] sm:$0xff] }
  0x1f   :  { %43 = vst.msk [vmem:[#allocation2 + $0x38] sm:$0x3] %vm42_vm2, %v1409_v0  ;;  %45 = vst.msk [vmem:[#allocation2 + $0x78] sm:$0x3] %vm42_vm2, %v1409_v0  ;;  %v1669_v44 = vld [vmem:[#allocation2 + $0xd0] sm:$0xff]  ;;  %v1677_v46 = vld [vmem:[#allocation2 + $0xe0] sm:$0xff] }
  0x20   :  { %47 = vst.msk [vmem:[#allocation2 + $0xb8] sm:$0x3] %vm42_vm2, %v1409_v0  ;;  %49 = vst.msk [vmem:[#allocation2 + $0xf8] sm:$0x3] %vm42_vm2, %v1409_v0  ;;  %v1701_v52 = vld [vmem:[#allocation2 + $0x110] sm:$0xff]  ;;  %v1709_v54 = vld [vmem:[#allocation2 + $0x120] sm:$0xff] }
  0x21   :  { %51 = vst.msk [vmem:[#allocation2 + $0x138] sm:$0x3] %vm42_vm2, %v1409_v0  ;;  %53 = vst.msk [vmem:[#allocation2 + $0x178] sm:$0x3] %vm42_vm2, %v1409_v0  ;;  %v1733_v60 = vld [vmem:[#allocation2 + $0x150] sm:$0xff]  ;;  %v1741_v62 = vld [vmem:[#allocation2 + $0x160] sm:$0xff] }
  0x22   :  { %55 = vst.msk [vmem:[#allocation2 + $0x1b8] sm:$0x3] %vm42_vm2, %v1409_v0  ;;  %57 = vst.msk [vmem:[#allocation2 + $0x1f8] sm:$0x3] %vm42_vm2, %v1409_v0  ;;  %v1549_v5 = vld [vmem:[#allocation2] sm:$0xc0] }
  0x23   :  { %25 = vst.msk [vmem:[#allocation2 + $0x8] sm:$0xc0] %vm24_vm3, %v1409_v0  ;;  %27 = vst.msk [vmem:[#allocation2 + $0x48] sm:$0xc0] %vm24_vm3, %v1409_v0  ;;  %253 = vrot.lane.b32.xlu0 %v1549_v5, %s1410_s0  ;;  %v1591_v20 = vld [vmem:[#allocation2 + $0x40] sm:$0xc0] }
  0x24   :  { %29 = vst.msk [vmem:[#allocation2 + $0x88] sm:$0xc0] %vm24_vm3, %v1409_v0  ;;  %31 = vst.msk [vmem:[#allocation2 + $0xc8] sm:$0xc0] %vm24_vm3, %v1409_v0  ;;  %v1629_v34 = vld [vmem:[#allocation2 + $0x80] sm:$0xc0] }
  0x25   :  { %33 = vst.msk [vmem:[#allocation2 + $0x108] sm:$0xc0] %vm24_vm3, %v1409_v0  ;;  %35 = vst.msk [vmem:[#allocation2 + $0x148] sm:$0xc0] %vm24_vm3, %v1409_v0  ;;  %v1661_v42 = vld [vmem:[#allocation2 + $0xc0] sm:$0xc0] }
  0x26   :  { %37 = vst.msk [vmem:[#allocation2 + $0x188] sm:$0xc0] %vm24_vm3, %v1409_v0  ;;  %39 = vst.msk [vmem:[#allocation2 + $0x1c8] sm:$0xc0] %vm24_vm3, %v1409_v0  ;;  %v1558_v6 = vld [vmem:[#allocation2 + $0x38] sm:$0x3] }
  0x27   :  { %76 = vst.msk [vmem:[#allocation2 + $0x18] sm:$0xff] %vm75_vm4, %v1409_v0  ;;  %77 = vst.msk [vmem:[#allocation2 + $0x28] sm:$0xff] %vm75_vm4, %v1409_v0  ;;  %267 = vrot.lane.b32.xlu1 %v1558_v6, %s1410_s0  ;;  %v1619_v31 = vld [vmem:[#allocation2 + $0x78] sm:$0x3]  ;;  %v1693_v50 = vld [vmem:[#allocation2 + $0x100] sm:$0xc0] }
  0x28   :  { %78 = vst.msk [vmem:[#allocation2 + $0x58] sm:$0xff] %vm75_vm4, %v1409_v0  ;;  %79 = vst.msk [vmem:[#allocation2 + $0x68] sm:$0xff] %vm75_vm4, %v1409_v0  ;;  %v1651_v39 = vld [vmem:[#allocation2 + $0xb8] sm:$0x3]  ;;  %v1725_v58 = vld [vmem:[#allocation2 + $0x140] sm:$0xc0] }
  0x29   :  { %80 = vst.msk [vmem:[#allocation2 + $0x98] sm:$0xff] %vm75_vm4, %v1409_v0  ;;  %81 = vst.msk [vmem:[#allocation2 + $0xa8] sm:$0xff] %vm75_vm4, %v1409_v0  ;;  %v1683_v47 = vld [vmem:[#allocation2 + $0xf8] sm:$0x3] }
  0x2a   :  { %82 = vst.msk [vmem:[#allocation2 + $0xd8] sm:$0xff] %vm75_vm4, %v1409_v0  ;;  %83 = vst.msk [vmem:[#allocation2 + $0xe8] sm:$0xff] %vm75_vm4, %v1409_v0  ;;  %v1560_v7 = vld [vmem:[#allocation2 + $0x8] sm:$0xc0]  ;;  %v1715_v55 = vld [vmem:[#allocation2 + $0x138] sm:$0x3] }
  0x2b   :  { %84 = vst.msk [vmem:[#allocation2 + $0x118] sm:$0xff] %vm75_vm4, %v1409_v0  ;;  %85 = vst.msk [vmem:[#allocation2 + $0x128] sm:$0xff] %vm75_vm4, %v1409_v0  ;;  %255 = vrot.lane.b32.xlu0 %v1560_v7, %s1410_s0  ;;  %v1567_v11 = vld [vmem:[#allocation2 + $0x48] sm:$0xc0]  ;;  %v1747_v63 = vld [vmem:[#allocation2 + $0x178] sm:$0x3] }
  0x2c   :  { %86 = vst.msk [vmem:[#allocation2 + $0x158] sm:$0xff] %vm75_vm4, %v1409_v0  ;;  %87 = vst.msk [vmem:[#allocation2 + $0x168] sm:$0xff] %vm75_vm4, %v1409_v0  ;;  %271 = vrot.lane.b32.xlu1 %v1567_v11, %s1410_s0  ;;  %v1627_v33 = vld [vmem:[#allocation2 + $0x88] sm:$0xc0] }
  0x2d   :  { %88 = vst.msk [vmem:[#allocation2 + $0x198] sm:$0xff] %vm75_vm4, %v1409_v0  ;;  %89 = vst.msk [vmem:[#allocation2 + $0x1a8] sm:$0xff] %vm75_vm4, %v1409_v0  ;;  %v1659_v41 = vld [vmem:[#allocation2 + $0xc8] sm:$0xc0] }
  0x2e   :  { %90 = vst.msk [vmem:[#allocation2 + $0x1d8] sm:$0xff] %vm75_vm4, %v1409_v0  ;;  %91 = vst.msk [vmem:[#allocation2 + $0x1e8] sm:$0xff] %vm75_vm4, %v1409_v0  ;;  %v1691_v49 = vld [vmem:[#allocation2 + $0x108] sm:$0xc0] }
  0x2f   :  { %41 = vst.msk [vmem:[#allocation2 + $0x30] sm:$0x3] %vm40_vm5, %v1409_v0  ;;  %44 = vst.msk [vmem:[#allocation2 + $0x70] sm:$0x3] %vm40_vm5, %v1409_v0  ;;  %261 = vrot.lane.b32.xlu0 %v1569_v12, %s1410_s0  ;;  %v1723_v57 = vld [vmem:[#allocation2 + $0x148] sm:$0xc0] }
  0x30   :  { %46 = vst.msk [vmem:[#allocation2 + $0xb0] sm:$0x3] %vm40_vm5, %v1409_v0  ;;  %48 = vst.msk [vmem:[#allocation2 + $0xf0] sm:$0x3] %vm40_vm5, %v1409_v0 }
  0x31   :  { %50 = vst.msk [vmem:[#allocation2 + $0x130] sm:$0x3] %vm40_vm5, %v1409_v0  ;;  %52 = vst.msk [vmem:[#allocation2 + $0x170] sm:$0x3] %vm40_vm5, %v1409_v0 }
  0x32   :  { %54 = vst.msk [vmem:[#allocation2 + $0x1b0] sm:$0x3] %vm40_vm5, %v1409_v0  ;;  %56 = vst.msk [vmem:[#allocation2 + $0x1f0] sm:$0x3] %vm40_vm5, %v1409_v0 }
  0x33   :  { %109 = vst.msk [vmem:[#allocation2 + $0x18] sm:$0xff] %vm108_vm6, %v92_v1  ;;  %110 = vst.msk [vmem:[#allocation2 + $0x28] sm:$0xff] %vm108_vm6, %v93_v2  ;;  %v1755_v1 = vld [vmem:[#allocation2 + $0x188] sm:$0xc0]  ;;  %v1757_v2 = vld [vmem:[#allocation2 + $0x180] sm:$0xc0] }
  0x34   :  { %111 = vst.msk [vmem:[#allocation2 + $0x58] sm:$0xff] %vm108_vm6, %v94_v3  ;;  %112 = vst.msk [vmem:[#allocation2 + $0x68] sm:$0xff] %vm108_vm6, %v95_v8  ;;  %v1765_v8 = vld [vmem:[#allocation2 + $0x190] sm:$0xff] }
  0x35   :  { %113 = vst.msk [vmem:[#allocation2 + $0x98] sm:$0xff] %vm108_vm6, %v96_v9  ;;  %114 = vst.msk [vmem:[#allocation2 + $0xa8] sm:$0xff] %vm108_vm6, %v97_v10  ;;  %v1773_v10 = vld [vmem:[#allocation2 + $0x1a0] sm:$0xff] }
  0x36   :  { %115 = vst.msk [vmem:[#allocation2 + $0xd8] sm:$0xff] %vm108_vm6, %v98_v13  ;;  %v1580_v16 = vld [vmem:[#allocation2 + $0x30] sm:$0x3]  ;;  %116 = vst.msk [vmem:[#allocation2 + $0xe8] sm:$0xff] %vm108_vm6, %v99_v14  ;;  %v1779_v13 = vld [vmem:[#allocation2 + $0x1b8] sm:$0x3] }
  0x37   :  { %117 = vst.msk [vmem:[#allocation2 + $0x118] sm:$0xff] %vm108_vm6, %v100_v17  ;;  %265 = vrot.lane.b32.xlu0 %v1580_v16, %s1410_s0  ;;  %118 = vst.msk [vmem:[#allocation2 + $0x128] sm:$0xff] %vm108_vm6, %v101_v18  ;;  %v1621_v32 = vld [vmem:[#allocation2 + $0x70] sm:$0x3]  ;;  %v1787_v17 = vld [vmem:[#allocation2 + $0x1c8] sm:$0xc0] }
  0x38   :  { %119 = vst.msk [vmem:[#allocation2 + $0x158] sm:$0xff] %vm108_vm6, %v102_v21  ;;  %120 = vst.msk [vmem:[#allocation2 + $0x168] sm:$0xff] %vm108_vm6, %v103_v22  ;;  %v1653_v40 = vld [vmem:[#allocation2 + $0xb0] sm:$0x3]  ;;  %v1789_v18 = vld [vmem:[#allocation2 + $0x1c0] sm:$0xc0] }
  0x39   :  { %121 = vst.msk [vmem:[#allocation2 + $0x198] sm:$0xff] %vm108_vm6, %v104_v25  ;;  %122 = vst.msk [vmem:[#allocation2 + $0x1a8] sm:$0xff] %vm108_vm6, %v105_v26  ;;  %v1685_v48 = vld [vmem:[#allocation2 + $0xf0] sm:$0x3] }
  0x3a   :  { %v1578_v15 = vld [vmem:[#allocation2 + $0x18] sm:$0xff]  ;;  %v1589_v19 = vld [vmem:[#allocation2 + $0x28] sm:$0xff]  ;;  %123 = vst.msk [vmem:[#allocation2 + $0x1d8] sm:$0xff] %vm108_vm6, %v106_v27  ;;  %124 = vst.msk [vmem:[#allocation2 + $0x1e8] sm:$0xff] %vm108_vm6, %v107_v30 }
  0x3b   :  { %259 = vrot.lane.b32.xlu1 %v1578_v15, %s1410_s0  ;;  %269 = vrot.lane.b32.xlu0 %v1591_v20, %s1410_s0  ;;  %v1599_v23 = vld [vmem:[#allocation2 + $0x58] sm:$0xff]  ;;  %v1609_v28 = vld [vmem:[#allocation2 + $0x68] sm:$0xff]  ;;  %3427 = vst [vmem:[#allocation7_spill] sm:$0xff] %v1627_v33  ;;  %3428 = vst [vmem:[#allocation8_spill] sm:$0xff] %v1629_v34 }
  0x3c   :  { %3426 = vst [vmem:[#allocation6_spill] sm:$0xff] %v1609_v28  ;;  %v1635_v35 = vld [vmem:[#allocation2 + $0x98] sm:$0xff]  ;;  %3430 = vst [vmem:[#allocation10_spill] sm:$0xff] %v1637_v36  ;;  %v1643_v37 = vld [vmem:[#allocation2 + $0xa8] sm:$0xff] }
  0x3d   :  { %3429 = vst [vmem:[#allocation9_spill] sm:$0xff] %v1635_v35  ;;  %3431 = vst [vmem:[#allocation11_spill] sm:$0xff] %v1643_v37  ;;  %v1667_v43 = vld [vmem:[#allocation2 + $0xd8] sm:$0xff]  ;;  %v1675_v45 = vld [vmem:[#allocation2 + $0xe8] sm:$0xff] }
  0x3e   :  { %3432 = vst [vmem:[#allocation12_spill] sm:$0xff] %v1645_v38  ;;  %3433 = vst [vmem:[#allocation13_spill] sm:$0xff] %v1651_v39  ;;  %v1699_v51 = vld [vmem:[#allocation2 + $0x118] sm:$0xff]  ;;  %v1707_v53 = vld [vmem:[#allocation2 + $0x128] sm:$0xff] }
  0x3f   :  { %263 = vrot.lane.b32.xlu1 %v1589_v19, %s1410_s0  ;;  %273 = vrot.lane.b32.xlu0 %v1601_v24, %s1410_s0  ;;  %3434 = vst [vmem:[#allocation14_spill] sm:$0xff] %v1653_v40  ;;  %3435 = vst [vmem:[#allocation15_spill] sm:$0xff] %v1659_v41  ;;  %v1717_v56 = vld [vmem:[#allocation2 + $0x130] sm:$0x3]  ;;  %v1731_v59 = vld [vmem:[#allocation2 + $0x158] sm:$0xff] }
  0x40   :  { %3436 = vst [vmem:[#allocation16_spill] sm:$0xff] %v1661_v42  ;;  %3437 = vst [vmem:[#allocation17_spill] sm:$0xff] %v1667_v43  ;;  %v1739_v61 = vld [vmem:[#allocation2 + $0x168] sm:$0xff]  ;;  %v1749_v0 = vld [vmem:[#allocation2 + $0x170] sm:$0x3] }
  0x41   :  { %3438 = vst [vmem:[#allocation18_spill] sm:$0xff] %v1669_v44  ;;  %3439 = vst [vmem:[#allocation19_spill] sm:$0xff] %v1675_v45  ;;  %v1763_v3 = vld [vmem:[#allocation2 + $0x198] sm:$0xff]  ;;  %v1771_v9 = vld [vmem:[#allocation2 + $0x1a8] sm:$0xff] }
  0x42   :  { %3440 = vst [vmem:[#allocation20_spill] sm:$0xff] %v1677_v46  ;;  %3441 = vst [vmem:[#allocation21_spill] sm:$0xff] %v1683_v47  ;;  %v1781_v14 = vld [vmem:[#allocation2 + $0x1b0] sm:$0x3]  ;;  %v1795_v21 = vld [vmem:[#allocation2 + $0x1d8] sm:$0xff] }
  0x43   :  { %275 = vrot.lane.b32.xlu1 %v1599_v23, %s1410_s0  ;;  %277 = vrot.lane.b32.xlu0 %v1611_v29, %s1410_s0  ;;  %3442 = vst [vmem:[#allocation22_spill] sm:$0xff] %v1685_v48  ;;  %3443 = vst [vmem:[#allocation23_spill] sm:$0xff] %v1691_v49  ;;  %v1797_v22 = vld [vmem:[#allocation2 + $0x1d0] sm:$0xff]  ;;  %v1807_v27 = vld [vmem:[#allocation2 + $0x1e8] sm:$0xff] }
  0x44   :  { %3444 = vst [vmem:[#allocation24_spill] sm:$0xff] %v1693_v50  ;;  %3445 = vst [vmem:[#allocation25_spill] sm:$0xff] %v1699_v51  ;;  %v1809_v30 = vld [vmem:[#allocation2 + $0x1e0] sm:$0xff] }
  0x45   :  { %3446 = vst [vmem:[#allocation26_spill] sm:$0xff] %v1701_v52  ;;  %3447 = vst [vmem:[#allocation27_spill] sm:$0xff] %v1707_v53 }
  0x46   :  { %3448 = vst [vmem:[#allocation28_spill] sm:$0xff] %v1709_v54  ;;  %3449 = vst [vmem:[#allocation29_spill] sm:$0xff] %v1715_v55 }
  0x47   :  { %279 = vrot.lane.b32.xlu1 %v1609_v28, %s1410_s0  ;;  %281 = vrot.lane.b32.xlu0 %v1621_v32, %s1410_s0  ;;  %3450 = vst [vmem:[#allocation30_spill] sm:$0xff] %v1717_v56  ;;  %3451 = vst [vmem:[#allocation31_spill] sm:$0xff] %v1723_v57 }
  0x48   :  { %3452 = vst [vmem:[#allocation32_spill] sm:$0xff] %v1725_v58  ;;  %3453 = vst [vmem:[#allocation33_spill] sm:$0xff] %v1731_v59 }
  0x49   :  { %3454 = vst [vmem:[#allocation34_spill] sm:$0xff] %v1733_v60  ;;  %3455 = vst [vmem:[#allocation35_spill] sm:$0xff] %v1739_v61 }
  0x4a   :  { %3456 = vst [vmem:[#allocation36_spill] sm:$0xff] %v1741_v62  ;;  %3457 = vst [vmem:[#allocation37_spill] sm:$0xff] %v1747_v63 }
  0x4b   :  { %283 = vrot.lane.b32.xlu1 %v1619_v31, %s1410_s0  ;;  %285 = vrot.lane.b32.xlu0 %v1629_v34, %s1410_s0  ;;  %3458 = vst [vmem:[#allocation38_spill] sm:$0xff] %v1749_v0  ;;  %3459 = vst [vmem:[#allocation39_spill] sm:$0xff] %v1755_v1 }
  0x4c   :  { %3460 = vst [vmem:[#allocation40_spill] sm:$0xff] %v1757_v2  ;;  %3461 = vst [vmem:[#allocation41_spill] sm:$0xff] %v1763_v3 }
  0x4d   :  { %3462 = vst [vmem:[#allocation42_spill] sm:$0xff] %v1765_v8  ;;  %3463 = vst [vmem:[#allocation43_spill] sm:$0xff] %v1771_v9 }
  0x4e   :  { %3464 = vst [vmem:[#allocation44_spill] sm:$0xff] %v1773_v10  ;;  %3465 = vst [vmem:[#allocation45_spill] sm:$0xff] %v1779_v13 }
  0x4f   :  { %287 = vrot.lane.b32.xlu1 %v1627_v33, %s1410_s0  ;;  %289 = vrot.lane.b32.xlu0 %v1637_v36, %s1410_s0  ;;  %3466 = vst [vmem:[#allocation46_spill] sm:$0xff] %v1781_v14  ;;  %3467 = vst [vmem:[#allocation47_spill] sm:$0xff] %v1787_v17 }
  0x50   :  { %3468 = vst [vmem:[#allocation48_spill] sm:$0xff] %v1789_v18  ;;  %3469 = vst [vmem:[#allocation49_spill] sm:$0xff] %v1795_v21 }
  0x51   :  { %3470 = vst [vmem:[#allocation50_spill] sm:$0xff] %v1797_v22  ;;  %3471 = vst [vmem:[#allocation51_spill] sm:$0xff] %v1807_v27 }
  0x52   :  { %3472 = vst [vmem:[#allocation52_spill] sm:$0xff] %v1809_v30 }
  0x53   :  { %291 = vrot.lane.b32.xlu1 %v1635_v35, %s1410_s0  ;;  %293 = vrot.lane.b32.xlu0 %v1645_v38, %s1410_s0 }
  0x57   :  { %295 = vrot.lane.b32.xlu1 %v1643_v37, %s1410_s0  ;;  %297 = vrot.lane.b32.xlu0 %v1653_v40, %s1410_s0 }
  0x5b   :  { %299 = vrot.lane.b32.xlu1 %v1651_v39, %s1410_s0  ;;  %301 = vrot.lane.b32.xlu0 %v1661_v42, %s1410_s0 }
  0x5f   :  { %303 = vrot.lane.b32.xlu1 %v1659_v41, %s1410_s0  ;;  %305 = vrot.lane.b32.xlu0 %v1669_v44, %s1410_s0 }
  0x63   :  { %307 = vrot.lane.b32.xlu1 %v1667_v43, %s1410_s0  ;;  %309 = vrot.lane.b32.xlu0 %v1677_v46, %s1410_s0 }
  0x67   :  { %311 = vrot.lane.b32.xlu1 %v1675_v45, %s1410_s0  ;;  %313 = vrot.lane.b32.xlu0 %v1685_v48, %s1410_s0 }
  0x6b   :  { %315 = vrot.lane.b32.xlu1 %v1683_v47, %s1410_s0  ;;  %317 = vrot.lane.b32.xlu0 %v1693_v50, %s1410_s0 }
  0x6f   :  { %319 = vrot.lane.b32.xlu1 %v1691_v49, %s1410_s0  ;;  %321 = vrot.lane.b32.xlu0 %v1701_v52, %s1410_s0 }
  0x73   :  { %323 = vrot.lane.b32.xlu1 %v1699_v51, %s1410_s0  ;;  %325 = vrot.lane.b32.xlu0 %v1709_v54, %s1410_s0 }
  0x77   :  { %327 = vrot.lane.b32.xlu1 %v1707_v53, %s1410_s0  ;;  %329 = vrot.lane.b32.xlu0 %v1717_v56, %s1410_s0 }
  0x7b   :  { %331 = vrot.lane.b32.xlu1 %v1715_v55, %s1410_s0  ;;  %333 = vrot.lane.b32.xlu0 %v1725_v58, %s1410_s0 }
  0x7f   :  { %335 = vrot.lane.b32.xlu1 %v1723_v57, %s1410_s0  ;;  %337 = vrot.lane.b32.xlu0 %v1733_v60, %s1410_s0 }
  0x83   :  { %339 = vrot.lane.b32.xlu1 %v1731_v59, %s1410_s0  ;;  %341 = vrot.lane.b32.xlu0 %v1741_v62, %s1410_s0 }
  0x87   :  { %343 = vrot.lane.b32.xlu1 %v1739_v61, %s1410_s0  ;;  %345 = vrot.lane.b32.xlu0 %v1749_v0, %s1410_s0 }
  0x8b   :  { %347 = vrot.lane.b32.xlu1 %v1747_v63, %s1410_s0  ;;  %349 = vrot.lane.b32.xlu0 %v1757_v2, %s1410_s0 }
  0x8d   :  { %v1799_v25 = vpop.permute.xlu1 %257 }
  0x8f   :  { %351 = vrot.lane.b32.xlu1 %v1755_v1, %s1410_s0  ;;  %353 = vrot.lane.b32.xlu0 %v1765_v8, %s1410_s0  ;;  %v1821_v8 = vld [vmem:[#allocation2 + $0x1f0] sm:$0x3] }
  0x90   :  { %3475 = vst [vmem:[#allocation55_spill] sm:$0xff] %v1821_v8 }
  0x93   :  { %355 = vrot.lane.b32.xlu1 %v1763_v3, %s1410_s0  ;;  %357 = vrot.lane.b32.xlu0 %v1773_v10, %s1410_s0  ;;  %v1819_v10 = vld [vmem:[#allocation2 + $0x1f8] sm:$0x3] }
  0x94   :  { %3474 = vst [vmem:[#allocation54_spill] sm:$0xff] %v1819_v10 }
  0x95   :  { %v1801_v26 = vpop.permute.xlu0 %253 }
  0x97   :  { %359 = vrot.lane.b32.xlu1 %v1771_v9, %s1410_s0  ;;  %361 = vrot.lane.b32.xlu0 %v1781_v14, %s1410_s0 }
  0x99   :  { %v1811_v14 = vpop.permute.xlu1 %267 }
  0x9a   :  { %3473 = vst [vmem:[#allocation53_spill] sm:$0xff] %v1811_v14 }
  0x9b   :  { %363 = vrot.lane.b32.xlu1 %v1779_v13, %s1410_s0  ;;  %365 = vrot.lane.b32.xlu0 %v1789_v18, %s1410_s0 }
  0x9d   :  { %v1813_v18 = vpop.permute.xlu0 %255 }
  0x9e   :  { %v1823_v2 = vpop.permute.xlu1 %271 }
  0x9f   :  { %367 = vrot.lane.b32.xlu1 %v1787_v17, %s1410_s0  ;;  %369 = vrot.lane.b32.xlu0 %v1797_v22, %s1410_s0 }
  0xa1   :  { %v1825_v22 = vpop.permute.xlu0 %261 }
  0xa3   :  { %371 = vrot.lane.b32.xlu1 %v1795_v21, %s1410_s0  ;;  %373 = vrot.lane.b32.xlu0 %v1809_v30, %s1410_s0 }
  0xa7   :  { %375 = vrot.lane.b32.xlu1 %v1807_v27, %s1410_s0  ;;  %377 = vrot.lane.b32.xlu0 %v1821_v8, %s1410_s0 }
  0xa9   :  { %v1833_v62 = vpop.permute.xlu0 %265 }
  0xab   :  { %379 = vrot.lane.b32.xlu1 %v1819_v10, %s1410_s0  ;;  %542 = vrot.lane.b32.xlu0 %v1560_v7, %s1411_s20 }
  0xad   :  { %v1831_v0 = vpop.permute.xlu1 %259  ;;  %v1841_v60 = vpop.permute.xlu0 %269 }
  0xaf   :  { %544 = vrot.lane.b32.xlu1 %v1578_v15, %s1411_s20  ;;  %546 = vrot.lane.b32.xlu0 %v1589_v19, %s1411_s20 }
  0xb1   :  { %v1839_v30 = vpop.permute.xlu1 %263  ;;  %v1849_v58 = vpop.permute.xlu0 %273 }
  0xb3   :  { %548 = vrot.lane.b32.xlu1 %v1558_v6, %s1411_s20  ;;  %550 = vrot.lane.b32.xlu0 %v1567_v11, %s1411_s20 }
  0xb5   :  { %v1847_v8 = vpop.permute.xlu1 %275  ;;  %v1857_v54 = vpop.permute.xlu0 %277 }
  0xb7   :  { %552 = vrot.lane.b32.xlu1 %v1599_v23, %s1411_s20  ;;  %554 = vrot.lane.b32.xlu0 %v1609_v28, %s1411_s20 }
  0xb9   :  { %v1855_v56 = vpop.permute.xlu1 %279  ;;  %v1865_v50 = vpop.permute.xlu0 %281 }
  0xba   :  { %3476 = vst [vmem:[#allocation56_spill] sm:$0xff] %v1855_v56 }
  0xbb   :  { %556 = vrot.lane.b32.xlu1 %v1619_v31, %s1411_s20  ;;  %558 = vrot.lane.b32.xlu0 %v1627_v33, %s1411_s20 }
  0xbd   :  { %v1863_v52 = vpop.permute.xlu1 %283  ;;  %v1873_v46 = vpop.permute.xlu0 %285 }
  0xbe   :  { %3477 = vst [vmem:[#allocation57_spill] sm:$0xff] %v1863_v52 }
  0xbf   :  { %560 = vrot.lane.b32.xlu1 %v1635_v35, %s1411_s20  ;;  %562 = vrot.lane.b32.xlu0 %v1643_v37, %s1411_s20 }
  0xc1   :  { %v1871_v48 = vpop.permute.xlu1 %287  ;;  %v1881_v42 = vpop.permute.xlu0 %289 }
  0xc2   :  { %3478 = vst [vmem:[#allocation58_spill] sm:$0xff] %v1871_v48 }
  0xc3   :  { %564 = vrot.lane.b32.xlu1 %v1651_v39, %s1411_s20  ;;  %566 = vrot.lane.b32.xlu0 %v1659_v41, %s1411_s20 }
  0xc5   :  { %v1879_v44 = vpop.permute.xlu1 %291  ;;  %v1889_v38 = vpop.permute.xlu0 %293 }
  0xc6   :  { %3479 = vst [vmem:[#allocation59_spill] sm:$0xff] %v1879_v44 }
  0xc7   :  { %568 = vrot.lane.b32.xlu1 %v1667_v43, %s1411_s20  ;;  %570 = vrot.lane.b32.xlu0 %v1675_v45, %s1411_s20 }
  0xc9   :  { %v1887_v40 = vpop.permute.xlu1 %295  ;;  %v1897_v37 = vpop.permute.xlu0 %297 }
  0xca   :  { %3480 = vst [vmem:[#allocation60_spill] sm:$0xff] %v1887_v40 }
  0xcb   :  { %572 = vrot.lane.b32.xlu1 %v1683_v47, %s1411_s20  ;;  %574 = vrot.lane.b32.xlu0 %v1691_v49, %s1411_s20 }
  0xcd   :  { %v1895_v39 = vpop.permute.xlu1 %299  ;;  %v1905_v41 = vpop.permute.xlu0 %301 }
  0xce   :  { %3481 = vst [vmem:[#allocation61_spill] sm:$0xff] %v1895_v39 }
  0xcf   :  { %576 = vrot.lane.b32.xlu1 %v1699_v51, %s1411_s20  ;;  %578 = vrot.lane.b32.xlu0 %v1707_v53, %s1411_s20 }
  0xd1   :  { %v1903_v43 = vpop.permute.xlu1 %303  ;;  %v1913_v45 = vpop.permute.xlu0 %305 }
  0xd2   :  { %3482 = vst [vmem:[#allocation62_spill] sm:$0xff] %v1903_v43 }
  0xd3   :  { %580 = vrot.lane.b32.xlu1 %v1715_v55, %s1411_s20  ;;  %582 = vrot.lane.b32.xlu0 %v1723_v57, %s1411_s20 }
  0xd5   :  { %v1911_v47 = vpop.permute.xlu1 %307  ;;  %v1921_v49 = vpop.permute.xlu0 %309 }
  0xd6   :  { %3483 = vst [vmem:[#allocation63_spill] sm:$0xff] %v1911_v47 }
  0xd7   :  { %584 = vrot.lane.b32.xlu1 %v1731_v59, %s1411_s20  ;;  %586 = vrot.lane.b32.xlu0 %v1739_v61, %s1411_s20 }
  0xd9   :  { %v1919_v51 = vpop.permute.xlu1 %311  ;;  %v1929_v53 = vpop.permute.xlu0 %313 }
  0xda   :  { %3484 = vst [vmem:[#allocation64_spill] sm:$0xff] %v1919_v51 }
  0xdb   :  { %588 = vrot.lane.b32.xlu1 %v1747_v63, %s1411_s20  ;;  %590 = vrot.lane.b32.xlu0 %v1755_v1, %s1411_s20 }
  0xdd   :  { %v1927_v55 = vpop.permute.xlu1 %315  ;;  %v1937_v57 = vpop.permute.xlu0 %317 }
  0xde   :  { %3485 = vst [vmem:[#allocation65_spill] sm:$0xff] %v1927_v55  ;;  %3487 = vst [vmem:[#allocation67_spill] sm:$0xff] %v1937_v57  ;;  %v2147_v33 = vsel %vm381_vm7, %v1929_v53, %v1927_v55 }
  0xdf   :  { %592 = vrot.lane.b32.xlu1 %v1763_v3, %s1411_s20  ;;  %594 = vrot.lane.b32.xlu0 %v1771_v9, %s1411_s20  ;;  %3526 = vst [vmem:[#allocation101_spill] sm:$0xff] %v2147_v33 }
  0xe1   :  { %v1935_v59 = vpop.permute.xlu1 %319  ;;  %v1945_v61 = vpop.permute.xlu0 %321 }
  0xe2   :  { %3486 = vst [vmem:[#allocation66_spill] sm:$0xff] %v1935_v59  ;;  %3489 = vst [vmem:[#allocation69_spill] sm:$0xff] %v1945_v61 }
  0xe3   :  { %596 = vrot.lane.b32.xlu1 %v1779_v13, %s1411_s20  ;;  %598 = vrot.lane.b32.xlu0 %v1787_v17, %s1411_s20 }
  0xe5   :  { %v1943_v63 = vpop.permute.xlu1 %323  ;;  %v1953_v1 = vpop.permute.xlu0 %325 }
  0xe6   :  { %3488 = vst [vmem:[#allocation68_spill] sm:$0xff] %v1943_v63  ;;  %3491 = vst [vmem:[#allocation71_spill] sm:$0xff] %v1953_v1 }
  0xe7   :  { %600 = vrot.lane.b32.xlu1 %v1795_v21, %s1411_s20  ;;  %602 = vrot.lane.b32.xlu0 %v1807_v27, %s1411_s20 }
  0xe9   :  { %v1951_v3 = vpop.permute.xlu1 %327  ;;  %v1961_v9 = vpop.permute.xlu0 %329 }
  0xea   :  { %3490 = vst [vmem:[#allocation70_spill] sm:$0xff] %v1951_v3  ;;  %3493 = vst [vmem:[#allocation73_spill] sm:$0xff] %v1961_v9 }
  0xeb   :  { %604 = vrot.lane.b32.xlu1 %v1819_v10, %s1411_s20 }
  0xed   :  { %v1959_v13 = vpop.permute.xlu1 %331  ;;  %v1965_v21 = vpop.permute.xlu0 %333 }
  0xee   :  { %3492 = vst [vmem:[#allocation72_spill] sm:$0xff] %v1959_v13  ;;  %3495 = vst [vmem:[#allocation75_spill] sm:$0xff] %v1965_v21 }
  0xf1   :  { %v1963_v61 = vpop.permute.xlu1 %335  ;;  %v1969_v17 = vpop.permute.xlu0 %337  ;;  %v3544_v53 = vld [vmem:[#allocation73_spill] sm:$0xff] }
  0xf2   :  { %3494 = vst [vmem:[#allocation74_spill] sm:$0xff] %v1963_v61  ;;  %3497 = vst [vmem:[#allocation77_spill] sm:$0xff] %v1969_v17 }
  0xf5   :  { %v1967_v63 = vpop.permute.xlu1 %339  ;;  %v1973_v1 = vpop.permute.xlu0 %341 }
  0xf6   :  { %3496 = vst [vmem:[#allocation76_spill] sm:$0xff] %v1967_v63  ;;  %3499 = vst [vmem:[#allocation79_spill] sm:$0xff] %v1973_v1 }
  0xf9   :  { %v1971_v3 = vpop.permute.xlu1 %343  ;;  %v346_v27 = vpop.permute.xlu0 %345  ;;  %v3551_v55 = vld [vmem:[#allocation77_spill] sm:$0xff] }
  0xfa   :  { %3498 = vst [vmem:[#allocation78_spill] sm:$0xff] %v1971_v3 }
  0xfd   :  { %v1975_v10 = vpop.permute.xlu1 %347  ;;  %v350_v61 = vpop.permute.xlu0 %349  ;;  %v3561_v35 = vld [vmem:[#allocation79_spill] sm:$0xff] }
  0xfe   :  { %3500 = vst [vmem:[#allocation80_spill] sm:$0xff] %v1975_v10  ;;  %v1979_v13 = vsel %vm381_vm7, %v346_v27, %v1975_v10 }
  0xff   :  { %3501 = vst [vmem:[#allocation81_spill] sm:$0xff] %v1979_v13 }
 0x101   :  { %v1981_v9 = vpop.permute.xlu1 %351  ;;  %v354_v3 = vpop.permute.xlu0 %353 }
 0x102   :  { %3502 = vst [vmem:[#allocation82_spill] sm:$0xff] %v1981_v9  ;;  %v1985_v63 = vsel %vm381_vm7, %v350_v61, %v1981_v9  ;;  %v2004_v61 = vsel %vm381_vm7, %v1801_v26, %v1813_v18  ;;  %v2096_v26 = vsel %vm381_vm7, %v1889_v38, %v1887_v40  ;;  %v3535_v38 = vld [vmem:[#allocation68_spill] sm:$0xff]  ;;  %v3536_v40 = vld [vmem:[#allocation69_spill] sm:$0xff] }
 0x103   :  { %3503 = vst [vmem:[#allocation83_spill] sm:$0xff] %v1985_v63  ;;  %3514 = vst [vmem:[#allocation94_spill] sm:$0xff] %v2096_v26  ;;  %v3537_v26 = vld [vmem:[#allocation70_spill] sm:$0xff]  ;;  %v3569_v33 = vmax.f32 %v1549_v5, %v2004_v61 }
 0x105   :  { %v1987_v17 = vpop.permute.xlu1 %355  ;;  %v358_v57 = vpop.permute.xlu0 %357 }
 0x106   :  { %3504 = vst [vmem:[#allocation84_spill] sm:$0xff] %v1987_v17  ;;  %v1991_v1 = vsel %vm381_vm7, %v354_v3, %v1987_v17  ;;  %v2032_v3 = vsel %vm381_vm7, %v1841_v60, %v1823_v2 }
 0x109   :  { %v1993_v21 = vpop.permute.xlu1 %359  ;;  %v362_v10 = vpop.permute.xlu0 %361 }
 0x10a   :  { %3505 = vst [vmem:[#allocation85_spill] sm:$0xff] %v1993_v21  ;;  %v1997_v27 = vsel %vm381_vm7, %v358_v57, %v1993_v21  ;;  %v2015_v57 = vsel %vm381_vm7, %v1799_v25, %v1831_v0 }
 0x10b   :  { %3506 = vst [vmem:[#allocation86_spill] sm:$0xff] %v1997_v27  ;;  %v2020_v27 = vsel %vm381_vm7, %v1833_v62, %v1811_v14  ;;  %v2072_v62 = vsel %vm381_vm7, %v1873_v46, %v1871_v48  ;;  %v2111_v14 = vsel %vm381_vm7, %v1897_v37, %v1895_v39  ;;  %v3531_v37 = vld [vmem:[#allocation67_spill] sm:$0xff]  ;;  %v3543_v39 = vld [vmem:[#allocation72_spill] sm:$0xff]  ;;  %v3567_v28 = vmax.f32 %v1547_v4, %v2015_v57  ;;  %v3573_v4 = vld [vmem:[#allocation37_spill] sm:$0xff] }
 0x10c   :  { %3511 = vst [vmem:[#allocation91_spill] sm:$0xff] %v2072_v62  ;;  %3516 = vst [vmem:[#allocation96_spill] sm:$0xff] %v2111_v14  ;;  %v3547_v14 = vld [vmem:[#allocation74_spill] sm:$0xff]  ;;  %v3574_v57 = vld [vmem:[#allocation81_spill] sm:$0xff] }
 0x10d   :  { %v1999_v13 = vpop.permute.xlu1 %363 }
 0x10e   :  { %3507 = vst [vmem:[#allocation87_spill] sm:$0xff] %v1999_v13  ;;  %v2008_v63 = vsel %vm381_vm7, %v362_v10, %v1999_v13  ;;  %v2027_v10 = vsel %vm381_vm7, %v1825_v22, %v1839_v30  ;;  %v2045_v22 = vsel %vm381_vm7, %v1849_v58, %v1847_v8  ;;  %v2058_v13 = vsel %vm381_vm7, %v1857_v54, %v1855_v56 }
 0x10f   :  { %3508 = vst [vmem:[#allocation88_spill] sm:$0xff] %v2008_v63  ;;  %v366_v63 = vpop.permute.xlu0 %365  ;;  %v2125_v56 = vsel %vm381_vm7, %v1913_v45, %v1911_v47  ;;  %v3548_v45 = vld [vmem:[#allocation75_spill] sm:$0xff]  ;;  %v3585_v21 = vmax.f32 %v1569_v12, %v2027_v10 }
 0x110   :  { %3518 = vst [vmem:[#allocation98_spill] sm:$0xff] %v2125_v56  ;;  %v2196_v47 = vsel %vm381_vm7, %v3548_v45, %v3547_v14  ;;  %v3550_v56 = vld [vmem:[#allocation76_spill] sm:$0xff] }
 0x111   :  { %v2034_v25 = vpop.permute.xlu1 %367  ;;  %3549 = vst [vmem:[#allocation73_spill] sm:$0xff] %v2196_v47  ;;  %v3556_v45 = vld [vmem:[#allocation28_spill] sm:$0xff] }
 0x112   :  { %3509 = vst [vmem:[#allocation89_spill] sm:$0xff] %v2034_v25  ;;  %v2049_v60 = vsel %vm381_vm7, %v366_v63, %v2034_v25  ;;  %v2067_v63 = vsel %vm381_vm7, %v1865_v50, %v1863_v52  ;;  %v2085_v50 = vsel %vm381_vm7, %v1881_v42, %v1879_v44  ;;  %v2120_v42 = vsel %vm381_vm7, %v1905_v41, %v1903_v43  ;;  %v3560_v52 = vld [vmem:[#allocation78_spill] sm:$0xff]  ;;  %v3572_v47 = vld [vmem:[#allocation80_spill] sm:$0xff] }
 0x113   :  { %3510 = vst [vmem:[#allocation90_spill] sm:$0xff] %v2049_v60  ;;  %3512 = vst [vmem:[#allocation92_spill] sm:$0xff] %v2085_v50  ;;  %v370_v46 = vpop.permute.xlu0 %369  ;;  %v2162_v43 = vsel %vm381_vm7, %v3531_v37, %v1935_v59  ;;  %v3553_v59 = vld [vmem:[#allocation25_spill] sm:$0xff]  ;;  %v3554_v37 = vld [vmem:[#allocation26_spill] sm:$0xff] }
 0x114   :  { %3517 = vst [vmem:[#allocation97_spill] sm:$0xff] %v2120_v42  ;;  %3532 = vst [vmem:[#allocation67_spill] sm:$0xff] %v2162_v43  ;;  %v2171_v42 = vsel %vm381_vm7, %v3536_v40, %v3535_v38  ;;  %v3558_v50 = vld [vmem:[#allocation30_spill] sm:$0xff]  ;;  %v2224_v38 = vsel %vm381_vm7, %v3561_v35, %v3560_v52  ;;  %v3568_v35 = vmax.f32 %v1578_v15, %v1831_v0 }
 0x115   :  { %v2087_v60 = vpop.permute.xlu1 %371  ;;  %3562 = vst [vmem:[#allocation77_spill] sm:$0xff] %v2224_v38  ;;  %v3565_v43 = vld [vmem:[#allocation34_spill] sm:$0xff] }
 0x116   :  { %3513 = vst [vmem:[#allocation93_spill] sm:$0xff] %v2087_v60  ;;  %v2100_v58 = vsel %vm381_vm7, %v370_v46, %v2087_v60  ;;  %v2136_v46 = vsel %vm381_vm7, %v1921_v49, %v1919_v51  ;;  %v3538_v49 = vld [vmem:[#allocation71_spill] sm:$0xff]  ;;  %v2201_v51 = vsel %vm381_vm7, %v3551_v55, %v3550_v56  ;;  %v3570_v55 = vmax.f32 %v1560_v7, %v1813_v18  ;;  %v3575_v44 = vld [vmem:[#allocation38_spill] sm:$0xff] }
 0x117   :  { %3515 = vst [vmem:[#allocation95_spill] sm:$0xff] %v2100_v58  ;;  %3522 = vst [vmem:[#allocation99_spill] sm:$0xff] %v2136_v46  ;;  %v374_v34 = vpop.permute.xlu0 %373  ;;  %v2176_v48 = vsel %vm381_vm7, %v3538_v49, %v3537_v26  ;;  %v2187_v46 = vsel %vm381_vm7, %v3544_v53, %v3543_v39  ;;  %v3564_v26 = vld [vmem:[#allocation33_spill] sm:$0xff]  ;;  %v3580_v39 = vld [vmem:[#allocation42_spill] sm:$0xff]  ;;  %v3582_v18 = vmax.f32 %v1580_v16, %v2020_v27 }
 0x118   :  { %3539 = vst [vmem:[#allocation69_spill] sm:$0xff] %v2176_v48  ;;  %v3595_v16 = vld [vmem:[#allocation88_spill] sm:$0xff]  ;;  %v3596_v27 = vld [vmem:[#allocation46_spill] sm:$0xff] }
 0x119   :  { %v2138_v41 = vpop.permute.xlu1 %375 }
 0x11a   :  { %3523 = vst [vmem:[#allocation100_spill] sm:$0xff] %v2138_v41  ;;  %v2151_v62 = vsel %vm381_vm7, %v374_v34, %v2138_v41 }
 0x11b   :  { %3527 = vst [vmem:[#allocation102_spill] sm:$0xff] %v2151_v62  ;;  %v378_v34 = vpop.permute.xlu0 %377 }
 0x11d   :  { %v2189_v40 = vpop.permute.xlu1 %379 }
 0x11e   :  { %3545 = vst [vmem:[#allocation71_spill] sm:$0xff] %v2189_v40  ;;  %v2205_v53 = vsel %vm381_vm7, %v378_v34, %v2189_v40  ;;  %v3669_v60 = vld [vmem:[#allocation99_spill] sm:$0xff] }
 0x11f   :  { %3552 = vst [vmem:[#allocation75_spill] sm:$0xff] %v2205_v53  ;;  %v543_v48 = vpop.permute.xlu0 %542 }
 0x120   :  { %v638_v34 = vmax.f32 %v3569_v33, %v543_v48  ;;  %v639_v36 = vmax.f32 %v3570_v55, %v543_v48 }
 0x121   :  { %v545_v54 = vpop.permute.xlu1 %544 }
 0x122   :  { %v2237_v14 = vmax.f32 %v3567_v28, %v545_v54  ;;  %v2242_v49 = vmax.f32 %v3568_v35, %v545_v54  ;;  %v767_v33 = vrot.slane %v638_v34, 1  ;;  %v770_v61 = vrot.slane %v639_v36, 1  ;;  %v3583_v35 = vld [vmem:[#allocation53_spill] sm:$0xff] }
 0x123   :  { %v547_v0 = vpop.permute.xlu0 %546  ;;  %v3584_v48 = vmax.f32 %v1558_v6, %v3583_v35  ;;  %v3593_v35 = vmax.f32 %v1591_v20, %v2032_v3 }
 0x124   :  { %v3404_v54 = vrot.slane %v2237_v14, 1  ;;  %v771_v5 = vrot.slane %v2242_v49, 1  ;;  %v2285_v56 = vmax.f32 %v3585_v21, %v547_v0 }
 0x125   :  { %v549_v52 = vpop.permute.xlu1 %548 }
 0x126   :  { %v769_v9 = vsel %vm766_vm8, %v767_v33, %v3404_v54  ;;  %v772_v15 = vsel %vm766_vm8, %v770_v61, %v771_v5  ;;  %v2275_v7 = vmax.f32 %v3582_v18, %v549_v52  ;;  %v2280_v28 = vmax.f32 %v3584_v48, %v549_v52 }
 0x127   :  { %v927_v17 = vmax.f32 %v638_v34, %v769_v9  ;;  %v928_v38 = vmax.f32 %v639_v36, %v772_v15  ;;  %v3586_v33 = vmax.f32 %v1589_v19, %v1839_v30  ;;  %v977_v52 = vrot.slane %v2242_v49, 2  ;;  %v551_v10 = vpop.permute.xlu0 %550 }
 0x128   :  { %v976_v36 = vrot.slane %v2237_v14, 2  ;;  %v777_v12 = vrot.slane %v2275_v7, 1  ;;  %v779_v9 = vrot.slane %v2280_v28, 1  ;;  %v773_v21 = vrot.slane %v2285_v56, 1 }
 0x129   :  { %v2290_v61 = vmax.f32 %v3586_v33, %v547_v0  ;;  %v553_v30 = vpop.permute.xlu1 %552  ;;  %v3591_v34 = vmax.f32 %v1601_v24, %v2045_v22  ;;  %v3592_v0 = vmax.f32 %v1599_v23, %v1847_v8  ;;  %v2315_v33 = vmax.f32 %v3593_v35, %v551_v10  ;;  %v3601_v35 = vld [vmem:[#allocation50_spill] sm:$0xff]  ;;  %v3665_v22 = vld [vmem:[#allocation21_spill] sm:$0xff] }
 0x12a   :  { %v3594_v18 = vmax.f32 %v1567_v11, %v1823_v2  ;;  %v1105_v54 = vmax.f32 %v928_v38, %v977_v52  ;;  %v1104_v23 = vmax.f32 %v927_v17, %v976_v36  ;;  %v778_v55 = vsel %vm766_vm8, %v773_v21, %v777_v12  ;;  %v3666_v8 = vld [vmem:[#allocation65_spill] sm:$0xff] }
 0x12b   :  { %v775_v19 = vrot.slane %v2290_v61, 1  ;;  %v2305_v15 = vmax.f32 %v3591_v34, %v553_v30  ;;  %v2310_v48 = vmax.f32 %v3592_v0, %v553_v30  ;;  %v781_v34 = vrot.slane %v2315_v33, 1  ;;  %v555_v3 = vpop.permute.xlu0 %554 }
 0x12c   :  { %v2320_v6 = vmax.f32 %v3594_v18, %v551_v10  ;;  %1202 = vrot.lane.b32.xlu1 %v1105_v54, %s1412_s21  ;;  %1200 = vrot.lane.b32.xlu0 %v1104_v23, %s1412_s21  ;;  %v982_v2 = vrot.slane %v2275_v7, 2  ;;  %v978_v62 = vrot.slane %v2285_v56, 2  ;;  %v980_v54 = vrot.slane %v2290_v61, 2 }
 0x12d   :  { %v557_v0 = vpop.permute.xlu1 %556  ;;  %v780_v11 = vsel %vm766_vm8, %v775_v19, %v779_v9  ;;  %v3606_v23 = vrot.slane %v2305_v15, 1  ;;  %v3607_v12 = vmax.f32 %v1621_v32, %v2067_v63  ;;  %v3608_v18 = vmax.f32 %v1611_v29, %v2058_v13  ;;  %v3610_v13 = vld [vmem:[#allocation57_spill] sm:$0xff] }
 0x12e   :  { %v784_v24 = vrot.slane %v2320_v6, 1  ;;  %v776_v7 = vsel %vm766_vm8, %v771_v5, %v775_v19  ;;  %v984_v17 = vrot.slane %v2280_v28, 2  ;;  %v931_v38 = vmax.f32 %v2285_v56, %v778_v55  ;;  %v3612_v28 = vld [vmem:[#allocation6_spill] sm:$0xff]  ;;  %v3613_v19 = vld [vmem:[#allocation56_spill] sm:$0xff] }
 0x12f   :  { %v783_v10 = vsel %vm766_vm8, %v781_v34, %v3606_v23  ;;  %v2357_v9 = vmax.f32 %v3607_v12, %v557_v0  ;;  %v2362_v40 = vmax.f32 %v3608_v18, %v555_v3  ;;  %v932_v53 = vmax.f32 %v2290_v61, %v780_v11  ;;  %v559_v41 = vpop.permute.xlu0 %558 }
 0x130   :  { %v3609_v63 = vrot.slane %v2310_v48, 1  ;;  %v3611_v18 = vmax.f32 %v1619_v31, %v3610_v13  ;;  %v3614_v56 = vmax.f32 %v3612_v28, %v3613_v19  ;;  %v933_v61 = vmax.f32 %v2315_v33, %v783_v10  ;;  %v3617_v28 = vld [vmem:[#allocation92_spill] sm:$0xff] }
 0x131   :  { %v561_v23 = vpop.permute.xlu1 %560  ;;  %v930_v11 = vmax.f32 %v2242_v49, %v776_v7  ;;  %v981_v12 = vsel %vm975_vm9, %v977_v52, %v980_v54  ;;  %v3615_v32 = vrot.slane %v2237_v14, 1  ;;  %v979_v13 = vsel %vm975_vm9, %v976_v36, %v978_v62  ;;  %v3619_v49 = vld [vmem:[#allocation9_spill] sm:$0xff]  ;;  %v3620_v52 = vld [vmem:[#allocation59_spill] sm:$0xff] }
 0x132   :  { %v786_v29 = vsel %vm766_vm8, %v784_v24, %v3609_v63  ;;  %v2376_v5 = vmax.f32 %v3611_v18, %v557_v0  ;;  %v2381_v55 = vmax.f32 %v3614_v56, %v555_v3  ;;  %v791_v63 = vrot.slane %v2357_v9, 1  ;;  %v3616_v18 = vld [vmem:[#allocation10_spill] sm:$0xff] }
 0x133   :  { %v774_v24 = vsel %vm766_vm8, %v3615_v32, %v773_v21  ;;  %v1107_v3 = vmax.f32 %v930_v11, %v981_v12  ;;  %v3618_v33 = vmax.f32 %v3616_v18, %v3617_v28  ;;  %v3621_v7 = vmax.f32 %v3619_v49, %v3620_v52  ;;  %v3622_v21 = vld [vmem:[#allocation8_spill] sm:$0xff]  ;;  %v3623_v32 = vld [vmem:[#allocation91_spill] sm:$0xff]  ;;  %v3626_v18 = vld [vmem:[#allocation58_spill] sm:$0xff] }
 0x134   :  { %v929_v0 = vmax.f32 %v2237_v14, %v774_v24  ;;  %v3624_v56 = vmax.f32 %v3622_v21, %v3623_v32  ;;  %v563_v14 = vpop.permute.xlu0 %562  ;;  %v793_v36 = vrot.slane %v2376_v5, 1  ;;  %v789_v11 = vrot.slane %v2381_v55, 1  ;;  %v3625_v24 = vld [vmem:[#allocation7_spill] sm:$0xff]  ;;  %v3630_v21 = vld [vmem:[#allocation14_spill] sm:$0xff] }
 0x135   :  { %v2396_v10 = vmax.f32 %v3618_v33, %v561_v23  ;;  %v2401_v19 = vmax.f32 %v3621_v7, %v561_v23  ;;  %v565_v31 = vpop.permute.xlu1 %564  ;;  %v3627_v28 = vmax.f32 %v3625_v24, %v3626_v18  ;;  %v934_v23 = vmax.f32 %v2320_v6, %v786_v29  ;;  %1206 = vrot.lane.b32.xlu1 %v1107_v3, %s1412_s21  ;;  %v3631_v7 = vld [vmem:[#allocation96_spill] sm:$0xff] }
 0x136   :  { %v2406_v34 = vmax.f32 %v3624_v56, %v559_v41  ;;  %v1106_v12 = vmax.f32 %v929_v0, %v979_v13  ;;  %v3628_v6 = vrot.slane %v2305_v15, 2  ;;  %v3629_v32 = vrot.slane %v2362_v40, 1 }
 0x137   :  { %v2413_v33 = vmax.f32 %v3627_v28, %v559_v41  ;;  %v985_v41 = vsel %vm975_vm9, %v980_v54, %v984_v17  ;;  %v983_v24 = vsel %vm975_vm9, %v978_v62, %v982_v2  ;;  %v3632_v17 = vmax.f32 %v3630_v21, %v3631_v7 }
 0x138   :  { %1204 = vrot.lane.b32.xlu0 %v1106_v12, %s1412_s21  ;;  %v795_v0 = vrot.slane %v2406_v34, 1  ;;  %v1110_v29 = vmax.f32 %v933_v61, %v3628_v6  ;;  %v2430_v3 = vsel %vm766_vm8, %v3629_v32, %v791_v63  ;;  %v1109_v56 = vmax.f32 %v932_v53, %v985_v41  ;;  %v567_v28 = vpop.permute.xlu0 %566  ;;  %v3633_v61 = vld [vmem:[#allocation13_spill] sm:$0xff]  ;;  %v3641_v41 = vld [vmem:[#allocation11_spill] sm:$0xff]  ;;  %v3642_v32 = vld [vmem:[#allocation60_spill] sm:$0xff] }
 0x139   :  { %v798_v13 = vrot.slane %v2413_v33, 1  ;;  %v569_v18 = vpop.permute.xlu1 %568  ;;  %v2434_v12 = vsel %vm766_vm8, %v789_v11, %v793_v36  ;;  %v1108_v49 = vmax.f32 %v931_v38, %v983_v24  ;;  %v2439_v54 = vmax.f32 %v3632_v17, %v565_v31  ;;  %v3634_v6 = vld [vmem:[#allocation61_spill] sm:$0xff]  ;;  %v3638_v38 = vld [vmem:[#allocation12_spill] sm:$0xff]  ;;  %v3639_v36 = vld [vmem:[#allocation94_spill] sm:$0xff] }
 0x13a   :  { %v3635_v52 = vmax.f32 %v3633_v61, %v3634_v6  ;;  %v3636_v53 = vrot.slane %v2396_v10, 1  ;;  %v3637_v2 = vrot.slane %v2401_v19, 1  ;;  %1210 = vrot.lane.b32.xlu1 %v1109_v56, %s1412_s21  ;;  %v3640_v7 = vmax.f32 %v3638_v38, %v3639_v36  ;;  %v3646_v56 = vld [vmem:[#allocation98_spill] sm:$0xff]  ;;  %v3649_v36 = vld [vmem:[#allocation63_spill] sm:$0xff] }
 0x13b   :  { %v3643_v24 = vmax.f32 %v3641_v41, %v3642_v32  ;;  %v990_v61 = vrot.slane %v2381_v55, 2  ;;  %v3659_v38 = vrot.slane %v2362_v40, 1  ;;  %v3667_v30 = vmax.f32 %v3665_v22, %v3666_v8  ;;  %v3683_v8 = vld [vmem:[#allocation24_spill] sm:$0xff] }
 0x13c   :  { %v2444_v25 = vmax.f32 %v3635_v52, %v565_v31  ;;  %v797_v62 = vsel %vm766_vm8, %v795_v0, %v3636_v53  ;;  %v800_v63 = vsel %vm766_vm8, %v798_v13, %v3637_v2  ;;  %v2456_v21 = vmax.f32 %v3640_v7, %v563_v14  ;;  %1208 = vrot.lane.b32.xlu0 %v1108_v49, %s1412_s21  ;;  %v3645_v13 = vld [vmem:[#allocation18_spill] sm:$0xff]  ;;  %v571_v49 = vpop.permute.xlu0 %570 }
 0x13d   :  { %v2461_v31 = vmax.f32 %v3643_v24, %v563_v14  ;;  %v3644_v52 = vrot.slane %v2310_v48, 2  ;;  %v988_v0 = vrot.slane %v2362_v40, 2  ;;  %v3647_v6 = vmax.f32 %v3645_v13, %v3646_v56  ;;  %v573_v32 = vpop.permute.xlu1 %572 }
 0x13e   :  { %v937_v2 = vmax.f32 %v2362_v40, %v2430_v3  ;;  %v938_v14 = vmax.f32 %v2381_v55, %v2434_v12  ;;  %v940_v13 = vmax.f32 %v2413_v33, %v800_v63  ;;  %v805_v3 = vrot.slane %v2439_v54, 1  ;;  %v3654_v63 = vld [vmem:[#allocation15_spill] sm:$0xff] }
 0x13f   :  { %v1111_v17 = vmax.f32 %v934_v23, %v3644_v52  ;;  %v2471_v53 = vmax.f32 %v3647_v6, %v569_v18  ;;  %v3648_v23 = vld [vmem:[#allocation17_spill] sm:$0xff]  ;;  %v939_v52 = vmax.f32 %v2406_v34, %v797_v62  ;;  %v807_v56 = vrot.slane %v2444_v25, 1 }
 0x140   :  { %v3650_v7 = vmax.f32 %v3648_v23, %v3649_v36  ;;  %1212 = vrot.lane.b32.xlu0 %v1110_v29, %s1412_s21  ;;  %v3651_v23 = vld [vmem:[#allocation16_spill] sm:$0xff]  ;;  %v3652_v34 = vld [vmem:[#allocation97_spill] sm:$0xff]  ;;  %v3655_v36 = vld [vmem:[#allocation62_spill] sm:$0xff]  ;;  %v3657_v55 = vrot.slane %v2310_v48, 1  ;;  %v3658_v29 = vrot.slane %v2310_v48, 2 }
 0x141   :  { %1214 = vrot.lane.b32.xlu1 %v1111_v17, %s1412_s21  ;;  %v3653_v62 = vmax.f32 %v3651_v23, %v3652_v34  ;;  %v3660_v23 = vrot.slane %v2305_v15, 1 }
 0x142   :  { %v2481_v41 = vmax.f32 %v3650_v7, %v569_v18  ;;  %v3656_v7 = vmax.f32 %v3654_v63, %v3655_v36  ;;  %v790_v12 = vsel %vm766_vm8, %v3657_v55, %v789_v11  ;;  %v991_v18 = vsel %vm975_vm9, %v3658_v29, %v990_v61  ;;  %v3661_v55 = vld [vmem:[#allocation22_spill] sm:$0xff] }
 0x143   :  { %v662_v33 = vmax.f32 %v3653_v62, %v567_v28  ;;  %v936_v17 = vmax.f32 %v2310_v48, %v790_v12  ;;  %v788_v34 = vsel %vm766_vm8, %v3660_v23, %v3659_v38  ;;  %v577_v62 = vpop.permute.xlu1 %576  ;;  %v3664_v29 = vrot.slane %v2305_v15, 2  ;;  %v3668_v23 = vld [vmem:[#allocation20_spill] sm:$0xff] }
 0x144   :  { %v663_v24 = vmax.f32 %v3656_v7, %v567_v28  ;;  %v575_v28 = vpop.permute.xlu0 %574  ;;  %v935_v11 = vmax.f32 %v2305_v15, %v788_v34  ;;  %v3662_v7 = vld [vmem:[#allocation101_spill] sm:$0xff]  ;;  %v2525_v38 = vmax.f32 %v3667_v30, %v573_v32  ;;  %v3670_v20 = vmax.f32 %v3668_v23, %v3669_v60  ;;  %v3674_v30 = vld [vmem:[#allocation19_spill] sm:$0xff] }
 0x145   :  { %v809_v63 = vrot.slane %v662_v33, 1  ;;  %v3663_v6 = vmax.f32 %v3661_v55, %v3662_v7  ;;  %v1113_v48 = vmax.f32 %v936_v17, %v991_v18  ;;  %v989_v40 = vsel %vm975_vm9, %v3664_v29, %v988_v0 }
 0x146   :  { %v812_v36 = vrot.slane %v663_v24, 1  ;;  %v2530_v58 = vmax.f32 %v3670_v20, %v571_v49  ;;  %v3671_v34 = vrot.slane %v2396_v10, 2  ;;  %v1112_v17 = vmax.f32 %v935_v11, %v989_v40  ;;  %v3675_v20 = vld [vmem:[#allocation64_spill] sm:$0xff] }
 0x147   :  { %v2517_v12 = vmax.f32 %v3663_v6, %v573_v32  ;;  %v3672_v6 = vrot.slane %v2401_v19, 2  ;;  %v3673_v7 = vrot.slane %v2456_v21, 1  ;;  %v1000_v60 = vrot.slane %v2461_v31, 2  ;;  %1218 = vrot.lane.b32.xlu1 %v1113_v48, %s1412_s21 }
 0x148   :  { %v1116_v55 = vmax.f32 %v939_v52, %v3671_v34  ;;  %v3676_v32 = vmax.f32 %v3674_v30, %v3675_v20  ;;  %v579_v29 = vpop.permute.xlu0 %578  ;;  %v3677_v11 = vrot.slane %v2461_v31, 1  ;;  %v3679_v34 = vrot.slane %v2481_v41, 1  ;;  %1216 = vrot.lane.b32.xlu0 %v1112_v17, %s1412_s21 }
 0x149   :  { %v1117_v18 = vmax.f32 %v940_v13, %v3672_v6  ;;  %v2540_v22 = vsel %vm766_vm8, %v3673_v7, %v805_v3  ;;  %v581_v13 = vpop.permute.xlu1 %580  ;;  %v3678_v3 = vrot.slane %v2471_v53, 1  ;;  %v821_v6 = vrot.slane %v2525_v38, 1 }
 0x14a   :  { %v2548_v52 = vmax.f32 %v3676_v32, %v571_v49  ;;  %v2553_v40 = vsel %vm766_vm8, %v3677_v11, %v807_v56  ;;  %v814_v48 = vsel %vm766_vm8, %v812_v36, %v3679_v34  ;;  %v819_v49 = vrot.slane %v2517_v12, 1 }
 0x14b   :  { %v811_v23 = vsel %vm766_vm8, %v809_v63, %v3678_v3  ;;  %v3413_v7 = vrot.slane %v2530_v58, 1  ;;  %v3680_v30 = vrot.slane %v2376_v5, 2  ;;  %v3681_v20 = vrot.slane %v2357_v9, 2 }
 0x14c   :  { %v3417_v32 = vrot.slane %v2548_v52, 1  ;;  %v3682_v17 = vmax.f32 %v3554_v37, %v2171_v42  ;;  %v943_v34 = vmax.f32 %v2456_v21, %v2540_v22  ;;  %v945_v15 = vmax.f32 %v662_v33, %v811_v23  ;;  %v3686_v42 = vld [vmem:[#allocation68_spill] sm:$0xff]  ;;  %v3688_v33 = vld [vmem:[#allocation23_spill] sm:$0xff]  ;;  %v3722_v22 = vld [vmem:[#allocation41_spill] sm:$0xff] }
 0x14d   :  { %v995_v56 = vsel %vm975_vm9, %v990_v61, %v3680_v30  ;;  %v993_v63 = vsel %vm975_vm9, %v988_v0, %v3681_v20  ;;  %v946_v5 = vmax.f32 %v663_v24, %v814_v48  ;;  %v3684_v61 = vld [vmem:[#allocation67_spill] sm:$0xff]  ;;  %v585_v0 = vpop.permute.xlu1 %584  ;;  %v583_v20 = vpop.permute.xlu0 %582  ;;  %v3687_v37 = vmax.f32 %v3553_v59, %v3686_v42 }
 0x14e   :  { %v1115_v11 = vmax.f32 %v938_v14, %v995_v56  ;;  %v1114_v36 = vmax.f32 %v937_v2, %v993_v63  ;;  %v2575_v3 = vmax.f32 %v3682_v17, %v577_v62  ;;  %v3685_v30 = vmax.f32 %v3683_v8, %v3684_v61  ;;  %v3689_v8 = vld [vmem:[#allocation66_spill] sm:$0xff] }
 0x14f   :  { %v944_v2 = vmax.f32 %v2461_v31, %v2553_v40  ;;  %v3412_v14 = vrot.slane %v2471_v53, 2  ;;  %v2592_v24 = vmax.f32 %v3687_v37, %v577_v62  ;;  %v3690_v23 = vmax.f32 %v3688_v33, %v3689_v8 }
 0x150   :  { %v2582_v9 = vmax.f32 %v3685_v30, %v575_v28  ;;  %1222 = vrot.lane.b32.xlu1 %v1115_v11, %s1412_s21  ;;  %1220 = vrot.lane.b32.xlu0 %v1114_v36, %s1412_s21  ;;  %v3414_v56 = vrot.slane %v2481_v41, 2  ;;  %v2606_v36 = vsel %vm766_vm8, %v3413_v7, %v819_v49  ;;  %v2611_v59 = vsel %vm766_vm8, %v3417_v32, %v821_v6  ;;  %v3700_v11 = vld [vmem:[#allocation70_spill] sm:$0xff] }
 0x151   :  { %v2597_v48 = vmax.f32 %v3690_v23, %v575_v28  ;;  %v3415_v62 = vrot.slane %v2575_v3, 1  ;;  %v2617_v17 = vmax.f32 %v945_v15, %v3412_v14  ;;  %v3691_v49 = vmax.f32 %v3558_v50, %v2187_v46  ;;  %v3694_v50 = vld [vmem:[#allocation69_spill] sm:$0xff]  ;;  %v589_v23 = vpop.permute.xlu1 %588  ;;  %v587_v63 = vpop.permute.xlu0 %586  ;;  %v3699_v14 = vld [vmem:[#allocation27_spill] sm:$0xff] }
 0x152   :  { %v823_v28 = vrot.slane %v2582_v9, 1  ;;  %v2621_v61 = vmax.f32 %v946_v5, %v3414_v56  ;;  %v3692_v6 = vrot.slane %v2461_v31, 1  ;;  %v3693_v42 = vrot.slane %v2401_v19, 1 }
 0x153   :  { %v2626_v30 = vmax.f32 %v3691_v49, %v581_v13  ;;  %v3416_v15 = vrot.slane %v2592_v24, 1  ;;  %v826_v8 = vrot.slane %v2597_v48, 1  ;;  %v3695_v46 = vmax.f32 %v3556_v45, %v3694_v50  ;;  %v3697_v45 = vld [vmem:[#allocation72_spill] sm:$0xff] }
 0x154   :  { %v804_v37 = vsel %vm766_vm8, %v3693_v42, %v3692_v6  ;;  %1226 = vrot.lane.b32.xlu1 %v1117_v18, %s1412_s21  ;;  %1224 = vrot.lane.b32.xlu0 %v1116_v55, %s1412_s21  ;;  %v3420_v42 = vrot.slane %v2575_v3, 2  ;;  %v1017_v40 = vrot.slane %v2592_v24, 2  ;;  %v825_v55 = vsel %vm766_vm8, %v823_v28, %v3415_v62  ;;  %v3696_v18 = vld [vmem:[#allocation29_spill] sm:$0xff] }
 0x155   :  { %v2641_v5 = vmax.f32 %v3695_v46, %v579_v29  ;;  %v3698_v50 = vmax.f32 %v3696_v18, %v3697_v45  ;;  %v3701_v49 = vmax.f32 %v3699_v14, %v3700_v11  ;;  %v942_v6 = vmax.f32 %v2401_v19, %v804_v37 }
 0x156   :  { %v833_v56 = vrot.slane %v2626_v30, 1  ;;  %v3702_v28 = vrot.slane %v2401_v19, 2  ;;  %v3704_v18 = vrot.slane %v2396_v10, 1  ;;  %v3705_v45 = vrot.slane %v2456_v21, 2 }
 0x157   :  { %v2655_v46 = vmax.f32 %v3698_v50, %v581_v13  ;;  %v2660_v7 = vmax.f32 %v3701_v49, %v579_v29  ;;  %v3703_v13 = vrot.slane %v2456_v21, 1  ;;  %v828_v29 = vsel %vm766_vm8, %v826_v8, %v3416_v15  ;;  %v3710_v15 = vld [vmem:[#allocation32_spill] sm:$0xff] }
 0x158   :  { %v1001_v62 = vsel %vm975_vm9, %v3702_v28, %v1000_v60  ;;  %v829_v11 = vrot.slane %v2641_v5, 1  ;;  %v3706_v19 = vrot.slane %v2396_v10, 2  ;;  %v3707_v28 = vmax.f32 %v3565_v43, %v2201_v51  ;;  %v3713_v43 = vld [vmem:[#allocation31_spill] sm:$0xff]  ;;  %v3714_v51 = vld [vmem:[#allocation74_spill] sm:$0xff] }
 0x159   :  { %v802_v14 = vsel %vm766_vm8, %v3704_v18, %v3703_v13  ;;  %v1119_v37 = vmax.f32 %v942_v6, %v1001_v62  ;;  %v3708_v13 = vld [vmem:[#allocation76_spill] sm:$0xff]  ;;  %v3711_v62 = vld [vmem:[#allocation73_spill] sm:$0xff]  ;;  %v835_v32 = vrot.slane %v2655_v46, 1  ;;  %v1018_v31 = vrot.slane %v2641_v5, 2 }
 0x15a   :  { %v941_v49 = vmax.f32 %v2396_v10, %v802_v14  ;;  %v999_v50 = vsel %vm975_vm9, %v3706_v19, %v3705_v45  ;;  %v2688_v33 = vmax.f32 %v3707_v28, %v585_v0  ;;  %v3709_v18 = vmax.f32 %v3564_v26, %v3708_v13  ;;  %v593_v26 = vpop.permute.xlu1 %592 }
 0x15b   :  { %v3712_v6 = vmax.f32 %v3710_v15, %v3711_v62  ;;  %v831_v10 = vrot.slane %v2660_v7, 1  ;;  %1230 = vrot.lane.b32.xlu1 %v1119_v37, %s1412_s21  ;;  %v3715_v19 = vmax.f32 %v3713_v43, %v3714_v51  ;;  %v591_v37 = vpop.permute.xlu0 %590 }
 0x15c   :  { %v2693_v8 = vmax.f32 %v3709_v18, %v585_v0  ;;  %v1118_v45 = vmax.f32 %v941_v49, %v999_v50  ;;  %v951_v0 = vmax.f32 %v2582_v9, %v825_v55  ;;  %v3418_v13 = vrot.slane %v2688_v33, 1 }
 0x15d   :  { %v2698_v14 = vmax.f32 %v3712_v6, %v583_v20  ;;  %v2706_v28 = vmax.f32 %v3715_v19, %v583_v20  ;;  %v3716_v18 = vrot.slane %v2444_v25, 2  ;;  %v952_v49 = vmax.f32 %v2597_v48, %v828_v29 }
 0x15e   :  { %v3419_v15 = vrot.slane %v2693_v8, 1  ;;  %1228 = vrot.lane.b32.xlu0 %v1118_v45, %s1412_s21  ;;  %v2724_v25 = vsel %vm766_vm8, %v829_v11, %v833_v56  ;;  %v3718_v48 = vrot.slane %v2456_v21, 2  ;;  %v2735_v6 = vsel %vm766_vm8, %v831_v10, %v835_v32 }
 0x15f   :  { %v1005_v62 = vsel %vm975_vm9, %v1000_v60, %v3716_v18  ;;  %v837_v20 = vrot.slane %v2698_v14, 1  ;;  %v840_v50 = vrot.slane %v2706_v28, 1  ;;  %v3717_v60 = vrot.slane %v2439_v54, 2 }
 0x160   :  { %v1121_v9 = vmax.f32 %v944_v2, %v1005_v62  ;;  %v3719_v56 = vmax.f32 %v3575_v44, %v3574_v57  ;;  %v3720_v54 = vmax.f32 %v3573_v4, %v3572_v47  ;;  %v3721_v44 = vmax.f32 %v3580_v39, %v1991_v1  ;;  %v597_v1 = vpop.permute.xlu1 %596  ;;  %v3725_v62 = vld [vmem:[#allocation36_spill] sm:$0xff] }
 0x161   :  { %v1003_v29 = vsel %vm975_vm9, %v3718_v48, %v3717_v60  ;;  %v2754_v32 = vsel %vm766_vm8, %v837_v20, %v3418_v13  ;;  %v2759_v21 = vsel %vm766_vm8, %v840_v50, %v3419_v15  ;;  %v2777_v51 = vmax.f32 %v952_v49, %v1017_v40  ;;  %v3726_v20 = vld [vmem:[#allocation77_spill] sm:$0xff] }
 0x162   :  { %1234 = vrot.lane.b32.xlu1 %v1121_v9, %s1412_s21  ;;  %v1120_v2 = vmax.f32 %v943_v34, %v1003_v29  ;;  %v2744_v45 = vmax.f32 %v3719_v56, %v589_v23  ;;  %v2749_v43 = vmax.f32 %v3720_v54, %v589_v23  ;;  %v2764_v57 = vmax.f32 %v3721_v44, %v593_v26  ;;  %v3723_v34 = vld [vmem:[#allocation84_spill] sm:$0xff]  ;;  %v595_v9 = vpop.permute.xlu0 %594  ;;  %v3729_v56 = vld [vmem:[#allocation78_spill] sm:$0xff] }
 0x163   :  { %v3724_v47 = vmax.f32 %v3722_v22, %v3723_v34  ;;  %v2773_v23 = vmax.f32 %v951_v0, %v3420_v42  ;;  %v1020_v39 = vrot.slane %v2660_v7, 2  ;;  %v3421_v18 = vrot.slane %v2688_v33, 2 }
 0x164   :  { %1232 = vrot.lane.b32.xlu0 %v1120_v2, %s1412_s21  ;;  %v3423_v0 = vrot.slane %v2693_v8, 2  ;;  %v3727_v50 = vmax.f32 %v3725_v62, %v3726_v20  ;;  %v957_v60 = vmax.f32 %v2698_v14, %v2754_v32  ;;  %v958_v48 = vmax.f32 %v2706_v28, %v2759_v21  ;;  %v3728_v2 = vld [vmem:[#allocation35_spill] sm:$0xff]  ;;  %v3731_v32 = vld [vmem:[#allocation40_spill] sm:$0xff] }
 0x165   :  { %v2769_v4 = vmax.f32 %v3724_v47, %v593_v26  ;;  %v3730_v54 = vmax.f32 %v3728_v2, %v3729_v56  ;;  %v849_v22 = vrot.slane %v2749_v43, 1  ;;  %v3424_v47 = vrot.slane %v2764_v57, 1  ;;  %v3732_v21 = vld [vmem:[#allocation83_spill] sm:$0xff] }
 0x166   :  { %v2790_v49 = vmax.f32 %v3727_v50, %v587_v63  ;;  %1238 = vrot.lane.b32.xlu1 %v2621_v61, %s1412_s21  ;;  %v3422_v28 = vrot.slane %v2764_v57, 2  ;;  %v3734_v20 = vld [vmem:[#allocation39_spill] sm:$0xff]  ;;  %v3735_v50 = vld [vmem:[#allocation82_spill] sm:$0xff]  ;;  %v3737_v56 = vrot.slane %v2548_v52, 1  ;;  %v3740_v13 = vrot.slane %v2481_v41, 2 }
 0x167   :  { %v2800_v44 = vmax.f32 %v3730_v54, %v587_v63  ;;  %v855_v14 = vrot.slane %v2769_v4, 1  ;;  %v3733_v63 = vmax.f32 %v3731_v32, %v3732_v21  ;;  %v3736_v61 = vmax.f32 %v3734_v20, %v3735_v50 }
 0x168   :  { %1236 = vrot.lane.b32.xlu0 %v2617_v17, %s1412_s21  ;;  %v3738_v54 = vrot.slane %v2481_v41, 1  ;;  %v3739_v17 = vrot.slane %v2548_v52, 2  ;;  %v3741_v32 = vrot.slane %v2530_v58, 1  ;;  %v3742_v21 = vrot.slane %v2471_v53, 1 }
 0x169   :  { %v686_v62 = vmax.f32 %v3733_v63, %v591_v37  ;;  %v687_v2 = vmax.f32 %v3736_v61, %v591_v37  ;;  %v3743_v63 = vmax.f32 %v3596_v27, %v3595_v16  ;;  %v3749_v27 = vld [vmem:[#allocation44_spill] sm:$0xff] }
 0x16a   :  { %v818_v34 = vsel %vm766_vm8, %v3738_v54, %v3737_v56  ;;  %v1011_v19 = vsel %vm975_vm9, %v3740_v13, %v3739_v17  ;;  %v816_v37 = vsel %vm766_vm8, %v3742_v21, %v3741_v32  ;;  %v3744_v56 = vld [vmem:[#allocation45_spill] sm:$0xff]  ;;  %v3745_v54 = vld [vmem:[#allocation87_spill] sm:$0xff]  ;;  %v601_v13 = vpop.permute.xlu1 %600  ;;  %v1037_v17 = vrot.slane %v2769_v4, 2 }
 0x16b   :  { %v948_v29 = vmax.f32 %v2481_v41, %v818_v34  ;;  %v2836_v20 = vmax.f32 %v3743_v63, %v597_v1  ;;  %v851_v50 = vrot.slane %v686_v62, 1  ;;  %v854_v61 = vrot.slane %v687_v2, 1  ;;  %v3750_v63 = vld [vmem:[#allocation86_spill] sm:$0xff] }
 0x16c   :  { %v947_v34 = vmax.f32 %v2471_v53, %v816_v37  ;;  %v3746_v41 = vmax.f32 %v3744_v56, %v3745_v54  ;;  %v3747_v32 = vrot.slane %v2530_v58, 2  ;;  %v3748_v21 = vrot.slane %v2471_v53, 2  ;;  %v599_v37 = vpop.permute.xlu0 %598 }
 0x16d   :  { %v1125_v55 = vmax.f32 %v948_v29, %v1011_v19  ;;  %v3751_v15 = vmax.f32 %v3749_v27, %v3750_v63  ;;  %v856_v19 = vsel %vm766_vm8, %v854_v61, %v855_v14  ;;  %v861_v56 = vrot.slane %v2836_v20, 1 }
 0x16e   :  { %v2842_v26 = vmax.f32 %v3746_v41, %v597_v1  ;;  %v1009_v16 = vsel %vm975_vm9, %v3748_v21, %v3747_v32  ;;  %v853_v1 = vsel %vm766_vm8, %v851_v50, %v3424_v47  ;;  %v964_v54 = vmax.f32 %v687_v2, %v856_v19  ;;  %v3753_v32 = vld [vmem:[#allocation85_spill] sm:$0xff] }
 0x16f   :  { %v2853_v42 = vmax.f32 %v3751_v15, %v595_v9  ;;  %v1124_v29 = vmax.f32 %v947_v34, %v1009_v16  ;;  %v963_v53 = vmax.f32 %v686_v62, %v853_v1  ;;  %1242 = vrot.lane.b32.xlu1 %v1125_v55, %s1412_s21  ;;  %v3752_v15 = vld [vmem:[#allocation43_spill] sm:$0xff]  ;;  %v845_v63 = vrot.slane %v2800_v44, 1 }
 0x170   :  { %v863_v41 = vrot.slane %v2842_v26, 1  ;;  %v3754_v21 = vmax.f32 %v3752_v15, %v3753_v32  ;;  %v3755_v62 = vrot.slane %v2525_v38, 2  ;;  %v3756_v2 = vrot.slane %v2548_v52, 2 }
 0x171   :  { %1240 = vrot.lane.b32.xlu0 %v1124_v29, %s1412_s21  ;;  %v3425_v61 = vrot.slane %v2853_v42, 1  ;;  %v2880_v34 = vmax.f32 %v963_v53, %v3422_v28  ;;  %v3757_v1 = vrot.slane %v2517_v12, 2  ;;  %v3758_v19 = vrot.slane %v2530_v58, 2 }
 0x172   :  { %v2867_v27 = vmax.f32 %v3754_v21, %v595_v9  ;;  %v1015_v55 = vsel %vm975_vm9, %v3756_v2, %v3755_v62  ;;  %v2884_v9 = vmax.f32 %v964_v54, %v1037_v17  ;;  %v3759_v53 = vmax.f32 %v2548_v52, %v2611_v59  ;;  %v3761_v21 = vld [vmem:[#allocation95_spill] sm:$0xff]  ;;  %v605_v2 = vpop.permute.xlu1 %604  ;;  %v3763_v52 = vld [vmem:[#allocation49_spill] sm:$0xff] }
 0x173   :  { %v1013_v38 = vsel %vm975_vm9, %v3758_v19, %v3757_v1  ;;  %v2895_v29 = vsel %vm766_vm8, %v3425_v61, %v861_v56  ;;  %v3760_v54 = vmax.f32 %v2530_v58, %v2606_v36  ;;  %v3762_v12 = vmax.f32 %v3601_v35, %v3761_v21  ;;  %v3764_v59 = vld [vmem:[#allocation93_spill] sm:$0xff]  ;;  %v3766_v58 = vld [vmem:[#allocation48_spill] sm:$0xff]  ;;  %v3767_v36 = vld [vmem:[#allocation90_spill] sm:$0xff] }
 0x174   :  { %v859_v16 = vrot.slane %v2867_v27, 1  ;;  %v1127_v15 = vmax.f32 %v3759_v53, %v1015_v55  ;;  %v3765_v55 = vmax.f32 %v3763_v52, %v3764_v59  ;;  %v603_v53 = vpop.permute.xlu0 %602 }
 0x175   :  { %v1126_v32 = vmax.f32 %v3760_v54, %v1013_v38  ;;  %v2906_v62 = vmax.f32 %v3762_v12, %v601_v13  ;;  %v3768_v38 = vmax.f32 %v3766_v58, %v3767_v36  ;;  %v2925_v54 = vmax.f32 %v957_v60, %v3421_v18  ;;  %v3770_v12 = vld [vmem:[#allocation89_spill] sm:$0xff]  ;;  %v3772_v36 = vld [vmem:[#allocation55_spill] sm:$0xff] }
 0x176   :  { %v2911_v1 = vsel %vm766_vm8, %v859_v16, %v863_v41  ;;  %v2918_v19 = vmax.f32 %v3765_v55, %v601_v13  ;;  %1246 = vrot.lane.b32.xlu1 %v1127_v15, %s1412_s21  ;;  %v3769_v13 = vld [vmem:[#allocation47_spill] sm:$0xff]  ;;  %v2937_v55 = vmax.f32 %v958_v48, %v3423_v0  ;;  %v3782_v0 = vld [vmem:[#allocation100_spill] sm:$0xff] }
 0x177   :  { %v694_v35 = vmax.f32 %v3768_v38, %v599_v37  ;;  %1244 = vrot.lane.b32.xlu0 %v1126_v32, %s1412_s21  ;;  %v866_v21 = vrot.slane %v2906_v62, 1  ;;  %v3771_v52 = vmax.f32 %v3769_v13, %v3770_v12  ;;  %v3773_v38 = vld [vmem:[#allocation75_spill] sm:$0xff]  ;;  %v3775_v32 = vld [vmem:[#allocation54_spill] sm:$0xff]  ;;  %v3778_v13 = vld [vmem:[#allocation52_spill] sm:$0xff] }
 0x178   :  { %v869_v60 = vrot.slane %v2918_v19, 1  ;;  %v3774_v18 = vmax.f32 %v3772_v36, %v3773_v38  ;;  %v3776_v41 = vld [vmem:[#allocation71_spill] sm:$0xff]  ;;  %v1028_v36 = vrot.slane %v2790_v49, 2  ;;  %v1046_v38 = vrot.slane %v2906_v62, 2 }
 0x179   :  { %v695_v59 = vmax.f32 %v3771_v52, %v599_v37  ;;  %v865_v58 = vrot.slane %v694_v35, 1  ;;  %v3777_v28 = vmax.f32 %v3775_v32, %v3776_v41  ;;  %v3779_v37 = vld [vmem:[#allocation102_spill] sm:$0xff]  ;;  %v3781_v48 = vld [vmem:[#allocation51_spill] sm:$0xff] }
 0x17a   :  { %v2943_v56 = vmax.f32 %v3774_v18, %v605_v2  ;;  %v3780_v12 = vmax.f32 %v3778_v13, %v3779_v37  ;;  %v3783_v47 = vmax.f32 %v3781_v48, %v3782_v0  ;;  %1250 = vrot.lane.b32.xlu1 %v2777_v51, %s1412_s21  ;;  %v1030_v37 = vrot.slane %v2800_v44, 2 }
 0x17b   :  { %v868_v15 = vrot.slane %v695_v59, 1  ;;  %v2948_v50 = vmax.f32 %v3777_v28, %v605_v2  ;;  %v867_v18 = vsel %vm766_vm8, %v865_v58, %v866_v21  ;;  %v3784_v28 = vrot.slane %v2592_v24, 1  ;;  %1248 = vrot.lane.b32.xlu0 %v2773_v23, %s1412_s21 }
 0x17c   :  { %v2953_v52 = vmax.f32 %v3780_v12, %v603_v53  ;;  %v2958_v61 = vmax.f32 %v3783_v47, %v603_v53  ;;  %v875_v41 = vrot.slane %v2943_v56, 1  ;;  %v969_v47 = vmax.f32 %v694_v35, %v867_v18 }
 0x17d   :  { %v832_v2 = vsel %vm766_vm8, %v3784_v28, %v831_v10  ;;  %v870_v0 = vsel %vm766_vm8, %v868_v15, %v869_v60  ;;  %v877_v53 = vrot.slane %v2948_v50, 1  ;;  %v1047_v58 = vrot.slane %v2918_v19, 2 }
 0x17e   :  { %v970_v32 = vmax.f32 %v695_v59, %v870_v0  ;;  %v871_v10 = vrot.slane %v2953_v52, 1  ;;  %v873_v13 = vrot.slane %v2958_v61, 1  ;;  %v2983_v12 = vmax.f32 %v969_v47, %v1046_v38 }
 0x17f   :  { %v954_v35 = vmax.f32 %v2592_v24, %v832_v2  ;;  %v1021_v23 = vsel %vm975_vm9, %v1017_v40, %v1020_v39  ;;  %v3785_v48 = vrot.slane %v2575_v3, 1  ;;  %v850_v40 = vsel %vm766_vm8, %v845_v63, %v849_v22 }
 0x180   :  { %v2991_v51 = vmax.f32 %v970_v32, %v1047_v58  ;;  %v876_v59 = vsel %vm766_vm8, %v871_v10, %v875_v41  ;;  %v878_v15 = vsel %vm766_vm8, %v873_v13, %v877_v53  ;;  %v1042_v41 = vrot.slane %v2836_v20, 2 }
 0x181   :  { %v830_v18 = vsel %vm766_vm8, %v3785_v48, %v829_v11  ;;  %v973_v28 = vmax.f32 %v2953_v52, %v876_v59  ;;  %v974_v2 = vmax.f32 %v2958_v61, %v878_v15  ;;  %v1131_v0 = vmax.f32 %v954_v35, %v1021_v23 }
 0x182   :  { %v953_v24 = vmax.f32 %v2575_v3, %v830_v18  ;;  %v1040_v47 = vrot.slane %v2867_v27, 2  ;;  %v3786_v11 = vrot.slane %v2575_v3, 2  ;;  %v1044_v32 = vrot.slane %v2842_v26, 2 }
 0x183   :  { %v1038_v35 = vrot.slane %v2853_v42, 2  ;;  %1254 = vrot.lane.b32.xlu1 %v1131_v0, %s1412_s21  ;;  %v3787_v22 = vrot.slane %v2693_v8, 1  ;;  %v1052_v59 = vrot.slane %v2943_v56, 2  ;;  %v1050_v15 = vrot.slane %v2958_v61, 2 }
 0x184   :  { %v1019_v53 = vsel %vm975_vm9, %v3786_v11, %v1018_v31  ;;  %v3788_v3 = vrot.slane %v2655_v46, 2  ;;  %v3789_v48 = vrot.slane %v2626_v30, 2  ;;  %v1054_v0 = vrot.slane %v2948_v50, 2 }
 0x185   :  { %v1130_v23 = vmax.f32 %v953_v24, %v1019_v53  ;;  %v846_v20 = vsel %vm766_vm8, %v3787_v22, %v845_v63  ;;  %v1048_v63 = vrot.slane %v2953_v52, 2  ;;  %v3790_v61 = vmax.f32 %v2660_v7, %v2735_v6 }
 0x186   :  { %v1025_v26 = vsel %vm975_vm9, %v1020_v39, %v3788_v3  ;;  %v1023_v18 = vsel %vm975_vm9, %v1018_v31, %v3789_v48  ;;  %v3791_v56 = vmax.f32 %v2641_v5, %v2724_v25  ;;  %v960_v30 = vmax.f32 %v2693_v8, %v846_v20 }
 0x187   :  { %1252 = vrot.lane.b32.xlu0 %v1130_v23, %s1412_s21  ;;  %v1133_v46 = vmax.f32 %v3790_v61, %v1025_v26  ;;  %v860_v31 = vsel %vm766_vm8, %v855_v14, %v859_v16  ;;  %v1041_v50 = vsel %vm975_vm9, %v1037_v17, %v1040_v47  ;;  %v3792_v52 = vrot.slane %v2853_v42, 1 }
 0x188   :  { %v1132_v39 = vmax.f32 %v3791_v56, %v1023_v18  ;;  %v3793_v7 = vrot.slane %v2764_v57, 1  ;;  %v3794_v5 = vrot.slane %v2790_v49, 1  ;;  %v3795_v25 = vrot.slane %v2688_v33, 1 }
 0x189   :  { %1258 = vrot.lane.b32.xlu1 %v1133_v46, %s1412_s21  ;;  %v966_v14 = vmax.f32 %v2769_v4, %v860_v31  ;;  %v3796_v17 = vrot.slane %v2764_v57, 2  ;;  %v1045_v53 = vsel %vm975_vm9, %v1040_v47, %v1044_v32  ;;  %v1043_v23 = vsel %vm975_vm9, %v1038_v35, %v1042_v41 }
 0x18a   :  { %v858_v6 = vsel %vm766_vm8, %v3793_v7, %v3792_v52  ;;  %v844_v24 = vsel %vm766_vm8, %v3795_v25, %v3794_v5  ;;  %v874_v22 = vsel %vm766_vm8, %v869_v60, %v873_v13  ;;  %v1051_v20 = vsel %vm975_vm9, %v1047_v58, %v1050_v15 }
 0x18b   :  { %v965_v16 = vmax.f32 %v2764_v57, %v858_v6  ;;  %v1039_v11 = vsel %vm975_vm9, %v3796_v17, %v1038_v35  ;;  %1256 = vrot.lane.b32.xlu0 %v1132_v39, %s1412_s21  ;;  %v1143_v3 = vmax.f32 %v966_v14, %v1041_v50  ;;  %v3797_v26 = vmax.f32 %v2867_v27, %v2911_v1 }
 0x18c   :  { %v3798_v48 = vmax.f32 %v2853_v42, %v2895_v29  ;;  %v972_v41 = vmax.f32 %v2918_v19, %v874_v22  ;;  %v872_v60 = vsel %vm766_vm8, %v866_v21, %v871_v10  ;;  %v1049_v58 = vsel %vm975_vm9, %v1046_v38, %v1048_v63 }
 0x18d   :  { %v1142_v4 = vmax.f32 %v965_v16, %v1039_v11  ;;  %v1145_v57 = vmax.f32 %v3797_v26, %v1045_v53  ;;  %v1055_v13 = vsel %vm975_vm9, %v1050_v15, %v1054_v0  ;;  %1262 = vrot.lane.b32.xlu1 %v2937_v55, %s1412_s21  ;;  %v959_v27 = vmax.f32 %v2688_v33, %v844_v24 }
 0x18e   :  { %v1144_v47 = vmax.f32 %v3798_v48, %v1043_v23  ;;  %v971_v1 = vmax.f32 %v2906_v62, %v872_v60  ;;  %v1151_v32 = vmax.f32 %v974_v2, %v1055_v13  ;;  %v1053_v42 = vsel %vm975_vm9, %v1048_v63, %v1052_v59 }
 0x18f   :  { %v3799_v29 = vrot.slane %v2744_v45, 1  ;;  %v3800_v19 = vmov %v3794_v5  ;;  %v3801_v38 = vrot.slane %v2693_v8, 2  ;;  %v1149_v55 = vmax.f32 %v972_v41, %v1051_v20  ;;  %1260 = vrot.lane.b32.xlu0 %v2925_v54, %s1412_s21 }
 0x190   :  { %v1150_v35 = vmax.f32 %v973_v28, %v1053_v42  ;;  %v962_v15 = vmax.f32 %v2800_v44, %v850_v40  ;;  %v1148_v2 = vmax.f32 %v971_v1, %v1049_v58  ;;  %v1032_v59 = vrot.slane %v2744_v45, 2 }
 0x191   :  { %v848_v21 = vsel %vm766_vm8, %v3800_v19, %v3799_v29  ;;  %v1031_v10 = vsel %vm975_vm9, %v3801_v38, %v1030_v37  ;;  %v3802_v18 = vrot.slane %v2688_v33, 2  ;;  %v3803_v40 = vrot.slane %v2749_v43, 2 }
 0x192   :  { %v1137_v62 = vmax.f32 %v960_v30, %v1031_v10  ;;  %v961_v8 = vmax.f32 %v2790_v49, %v848_v21  ;;  %v1033_v33 = vsel %vm975_vm9, %v1028_v36, %v1032_v59 }
 0x193   :  { %v1029_v0 = vsel %vm975_vm9, %v3802_v18, %v1028_v36  ;;  %v1035_v54 = vsel %vm975_vm9, %v1030_v37, %v3803_v40 }
 0x194   :  { %1266 = vrot.lane.b32.xlu1 %v1137_v62, %s1412_s21  ;;  %v1136_v28 = vmax.f32 %v959_v27, %v1029_v0  ;;  %v1139_v45 = vmax.f32 %v962_v15, %v1035_v54  ;;  %v1138_v63 = vmax.f32 %v961_v8, %v1033_v33 }
 0x196   :  { %1264 = vrot.lane.b32.xlu0 %v1136_v28, %s1412_s21 }
 0x198   :  { %1270 = vrot.lane.b32.xlu1 %v1139_v45, %s1412_s21 }
 0x19a   :  { %1268 = vrot.lane.b32.xlu0 %v1138_v63, %s1412_s21 }
 0x19c   :  { %1274 = vrot.lane.b32.xlu1 %v2884_v9, %s1412_s21 }
 0x19e   :  { %1272 = vrot.lane.b32.xlu0 %v2880_v34, %s1412_s21  ;;  %v1203_v43 = vpop.permute.xlu1 %1202  ;;  %v1201_v49 = vpop.permute.xlu0 %1200 }
 0x19f   :  { %v1297_v44 = vsel %vm1296_vm10, %v1201_v49, %v1203_v43 }
 0x1a0   :  { %1278 = vrot.lane.b32.xlu1 %v1143_v3, %s1412_s21  ;;  %1345 = vst.msk [vmem:[%s3262_s1 - $0x6] sm:$0xc0] %vm24_vm3, %v1297_v44 }
 0x1a2   :  { %1276 = vrot.lane.b32.xlu0 %v1142_v4, %s1412_s21 }
 0x1a4   :  { %1282 = vrot.lane.b32.xlu1 %v1145_v57, %s1412_s21 }
 0x1a6   :  { %1280 = vrot.lane.b32.xlu0 %v1144_v47, %s1412_s21 }
 0x1a7   :  { %v1207_v34 = vpop.permute.xlu1 %1206 }
 0x1a8   :  { %1286 = vrot.lane.b32.xlu1 %v2991_v51, %s1412_s21 }
 0x1aa   :  { %1284 = vrot.lane.b32.xlu0 %v2983_v12, %s1412_s21  ;;  %v1205_v9 = vpop.permute.xlu0 %1204 }
 0x1ab   :  { %v1298_v36 = vsel %vm1296_vm10, %v1205_v9, %v1207_v34 }
 0x1ac   :  { %1290 = vrot.lane.b32.xlu1 %v1149_v55, %s1412_s21  ;;  %1347 = vst.msk [vmem:[%s3262_s1 + $0x2] sm:$0xff] %vm1346_vm11, %v1298_v36  ;;  %v1211_v37 = vpop.permute.xlu1 %1210 }
 0x1ae   :  { %1288 = vrot.lane.b32.xlu0 %v1148_v2, %s1412_s21  ;;  %v1209_v12 = vpop.permute.xlu0 %1208 }
 0x1af   :  { %v1299_v51 = vsel %vm1296_vm10, %v1209_v12, %v1211_v37 }
 0x1b0   :  { %1294 = vrot.lane.b32.xlu1 %v1151_v32, %s1412_s21  ;;  %1348 = vst.msk [vmem:[%s3262_s1 + $0xa] sm:$0xff] %vm1346_vm11, %v1299_v51 }
 0x1b2   :  { %1292 = vrot.lane.b32.xlu0 %v1150_v35, %s1412_s21  ;;  %v1213_v46 = vpop.permute.xlu0 %1212 }
 0x1b3   :  { %v1215_v61 = vpop.permute.xlu1 %1214 }
 0x1b4   :  { %v1300_v56 = vsel %vm1296_vm10, %v1213_v46, %v1215_v61 }
 0x1b5   :  { %1349 = vst.msk [vmem:[%s3262_s1 + $0x12] sm:$0xc0] %vm24_vm3, %v1300_v56 }
 0x1b9   :  { %v1219_v39 = vpop.permute.xlu1 %1218 }
 0x1ba   :  { %v1217_v30 = vpop.permute.xlu0 %1216 }
 0x1bb   :  { %v1301_v31 = vsel %vm1296_vm10, %v1217_v30, %v1219_v39 }
 0x1bc   :  { %1350 = vst.msk [vmem:[%s3262_s1 + $0x1a] sm:$0xff] %vm1346_vm11, %v1301_v31 }
 0x1c2   :  { %v1223_v50 = vpop.permute.xlu1 %1222  ;;  %v1221_v52 = vpop.permute.xlu0 %1220 }
 0x1c3   :  { %v1302_v7 = vsel %vm1296_vm10, %v1221_v52, %v1223_v50 }
 0x1c4   :  { %1351 = vst.msk [vmem:[%s3262_s1 + $0x22] sm:$0xff] %vm1346_vm11, %v1302_v7 }
 0x1c6   :  { %v1227_v6 = vpop.permute.xlu1 %1226  ;;  %v1225_v5 = vpop.permute.xlu0 %1224 }
 0x1c7   :  { %v1303_v25 = vsel %vm1296_vm10, %v1225_v5, %v1227_v6 }
 0x1c8   :  { %1352 = vst.msk [vmem:[%s3262_s1 + $0x2a] sm:$0xc0] %vm24_vm3, %v1303_v25 }
 0x1cd   :  { %v1231_v24 = vpop.permute.xlu1 %1230 }
 0x1d0   :  { %v1229_v14 = vpop.permute.xlu0 %1228 }
 0x1d1   :  { %v1304_v16 = vsel %vm1296_vm10, %v1229_v14, %v1231_v24 }
 0x1d2   :  { %1353 = vst.msk [vmem:[%s3262_s1 + $0x32] sm:$0xff] %vm1346_vm11, %v1304_v16 }
 0x1d4   :  { %v1235_v17 = vpop.permute.xlu1 %1234 }
 0x1d6   :  { %v1233_v11 = vpop.permute.xlu0 %1232 }
 0x1d7   :  { %v1305_v53 = vsel %vm1296_vm10, %v1233_v11, %v1235_v17 }
 0x1d8   :  { %1354 = vst.msk [vmem:[%s3262_s1 + $0x3a] sm:$0xff] %vm1346_vm11, %v1305_v53  ;;  %v1239_v23 = vpop.permute.xlu1 %1238 }
 0x1da   :  { %v1237_v22 = vpop.permute.xlu0 %1236 }
 0x1db   :  { %v1306_v20 = vsel %vm1296_vm10, %v1237_v22, %v1239_v23 }
 0x1dc   :  { %1355 = vst.msk [vmem:[%s3262_s1 + $0x42] sm:$0xc0] %vm24_vm3, %v1306_v20 }
 0x1e1   :  { %v1243_v3 = vpop.permute.xlu1 %1242 }
 0x1e3   :  { %v1241_v4 = vpop.permute.xlu0 %1240 }
 0x1e4   :  { %v1307_v26 = vsel %vm1296_vm10, %v1241_v4, %v1243_v3 }
 0x1e5   :  { %1356 = vst.msk [vmem:[%s3262_s1 + $0x4a] sm:$0xff] %vm1346_vm11, %v1307_v26 }
 0x1e8   :  { %v1247_v57 = vpop.permute.xlu1 %1246 }
 0x1e9   :  { %v1245_v48 = vpop.permute.xlu0 %1244 }
 0x1ea   :  { %v1308_v47 = vsel %vm1296_vm10, %v1245_v48, %v1247_v57 }
 0x1eb   :  { %1357 = vst.msk [vmem:[%s3262_s1 + $0x52] sm:$0xff] %vm1346_vm11, %v1308_v47 }
 0x1ec   :  { %v1251_v41 = vpop.permute.xlu1 %1250 }
 0x1ed   :  { %v1249_v60 = vpop.permute.xlu0 %1248 }
 0x1ee   :  { %v1309_v58 = vsel %vm1296_vm10, %v1249_v60, %v1251_v41 }
 0x1ef   :  { %1358 = vst.msk [vmem:[%s3262_s1 + $0x5a] sm:$0xc0] %vm24_vm3, %v1309_v58 }
 0x1f5   :  { %v1255_v13 = vpop.permute.xlu1 %1254 }
 0x1f9   :  { %v1253_v27 = vpop.permute.xlu0 %1252 }
 0x1fa   :  { %v1310_v1 = vsel %vm1296_vm10, %v1253_v27, %v1255_v13 }
 0x1fb   :  { %1359 = vst.msk [vmem:[%s3262_s1 + $0x62] sm:$0xff] %vm1346_vm11, %v1310_v1  ;;  %v1259_v32 = vpop.permute.xlu1 %1258 }
 0x1fd   :  { %v1257_v42 = vpop.permute.xlu0 %1256 }
 0x1fe   :  { %v1311_v29 = vsel %vm1296_vm10, %v1257_v42, %v1259_v32 }
 0x1ff   :  { %1360 = vst.msk [vmem:[%s3262_s1 + $0x6a] sm:$0xff] %vm1346_vm11, %v1311_v29  ;;  %v1263_v19 = vpop.permute.xlu1 %1262 }
 0x201   :  { %v1261_v21 = vpop.permute.xlu0 %1260 }
 0x202   :  { %v1312_v38 = vsel %vm1296_vm10, %v1261_v21, %v1263_v19 }
 0x203   :  { %1361 = vst.msk [vmem:[%s3262_s1 + $0x72] sm:$0xc0] %vm24_vm3, %v1312_v38 }
 0x206   :  { %v1267_v10 = vpop.permute.xlu1 %1266 }
 0x208   :  { %v1265_v55 = vpop.permute.xlu0 %1264 }
 0x209   :  { %v1313_v35 = vsel %vm1296_vm10, %v1265_v55, %v1267_v10 }
 0x20a   :  { %1362 = vst.msk [vmem:[%s3262_s1 + $0x7a] sm:$0xff] %vm1346_vm11, %v1313_v35  ;;  %v1271_v15 = vpop.permute.xlu1 %1270 }
 0x20c   :  { %v1269_v62 = vpop.permute.xlu0 %1268 }
 0x20d   :  { %v1314_v2 = vsel %vm1296_vm10, %v1269_v62, %v1271_v15 }
 0x20e   :  { %1363 = vst.msk [vmem:[%s3262_s1 + $0x82] sm:$0xff] %vm1346_vm11, %v1314_v2  ;;  %v1275_v59 = vpop.permute.xlu1 %1274 }
 0x210   :  { %v1273_v18 = vpop.permute.xlu0 %1272 }
 0x211   :  { %v1315_v0 = vsel %vm1296_vm10, %v1273_v18, %v1275_v59 }
 0x212   :  { %1364 = vst.msk [vmem:[%s3262_s1 + $0x8a] sm:$0xc0] %vm24_vm3, %v1315_v0  ;;  %v1279_v8 = vpop.permute.xlu1 %1278 }
 0x214   :  { %v1277_v28 = vpop.permute.xlu0 %1276 }
 0x215   :  { %v1316_v40 = vsel %vm1296_vm10, %v1277_v28, %v1279_v8 }
 0x216   :  { %1365 = vst.msk [vmem:[%s3262_s1 + $0x92] sm:$0xff] %vm1346_vm11, %v1316_v40  ;;  %v1283_v54 = vpop.permute.xlu1 %1282 }
 0x218   :  { %v1281_v45 = vpop.permute.xlu0 %1280 }
 0x219   :  { %v1317_v33 = vsel %vm1296_vm10, %v1281_v45, %v1283_v54 }
 0x21a   :  { %1366 = vst.msk [vmem:[%s3262_s1 + $0x9a] sm:$0xff] %vm1346_vm11, %v1317_v33  ;;  %v1287_v63 = vpop.permute.xlu1 %1286 }
 0x21c   :  { %v1285_v43 = vpop.permute.xlu0 %1284 }
 0x21d   :  { %v1318_v49 = vsel %vm1296_vm10, %v1285_v43, %v1287_v63 }
 0x21e   :  { %1367 = vst.msk [vmem:[%s3262_s1 + $0xa2] sm:$0xc0] %vm24_vm3, %v1318_v49  ;;  %v1291_v44 = vpop.permute.xlu1 %1290 }
 0x220   :  { %v1289_v34 = vpop.permute.xlu0 %1288 }
 0x221   :  { %v1319_v9 = vsel %vm1296_vm10, %v1289_v34, %v1291_v44 }
 0x222   :  { %1368 = vst.msk [vmem:[%s3262_s1 + $0xaa] sm:$0xff] %vm1346_vm11, %v1319_v9  ;;  %v1295_v36 = vpop.permute.xlu1 %1294 }
 0x224   :  { %v1293_v37 = vpop.permute.xlu0 %1292 }
 0x225   :  { %v1320_v12 = vsel %vm1296_vm10, %v1293_v37, %v1295_v36 }
 0x226   :  { %1369 = vst.msk [vmem:[%s3262_s1 + $0xb2] sm:$0xff] %vm1346_vm11, %v1320_v12 }
 0x227   :  { %1374 = vsyncpa [#allocation4], 1 }

</bundles_post_ra>
